<compile_context>
chip_gen: v7x
topology: tpu7x:2x2x1
jax: 0.10.0
libtpu: 0.0.40
codegen_flags: <defaults>
</compile_context>

<pallas_src>
import jax
import jax.numpy as jnp
from jax.experimental import pallas as pl
from jax.experimental.pallas import tpu as pltpu


def lstm_fc_kernel(x_ref, w_ih_ref, w_hh_ref, b_ref, w_fc_ref, b_fc_ref,
                   out_ref, xg_i_ref, xg_f_ref, xg_g_ref, xg_o_ref):
    T, B = x_ref.shape
    H = w_hh_ref.shape[1]

    # ---- hoisted input projection + bias (outside the serial recurrence) ----
    # input_size == 1, so the per-gate input projection is an outer product:
    #   xg[g][t, b, :] = x[t, b] * w_ih[g, :] + (b_ih + b_hh)[g, :]
    x_b = x_ref[...][:, :, None]            # (T, B, 1)
    w_ih = w_ih_ref[...]                    # (4, H)
    b = b_ref[...]                          # (4, H)
    xg_i_ref[...] = x_b * w_ih[0] + b[0]    # (T, B, H)
    xg_f_ref[...] = x_b * w_ih[1] + b[1]
    xg_g_ref[...] = x_b * w_ih[2] + b[2]
    xg_o_ref[...] = x_b * w_ih[3] + b[3]

    # Per-gate recurrent weights (static slices, hoisted out of the loop);
    # each is (H, H) laid out so that h @ w gives a clean (B, H) tile.
    w_hh_i = w_hh_ref[0]
    w_hh_f = w_hh_ref[1]
    w_hh_g = w_hh_ref[2]
    w_hh_o = w_hh_ref[3]

    def step(t, carry):
        h, c = carry
        # PyTorch gate ordering: i, f, g, o
        i = jax.nn.sigmoid(xg_i_ref[t] +
                           jnp.dot(h, w_hh_i, preferred_element_type=jnp.float32))
        f = jax.nn.sigmoid(xg_f_ref[t] +
                           jnp.dot(h, w_hh_f, preferred_element_type=jnp.float32))
        g = jnp.tanh(xg_g_ref[t] +
                     jnp.dot(h, w_hh_g, preferred_element_type=jnp.float32))
        o = jax.nn.sigmoid(xg_o_ref[t] +
                           jnp.dot(h, w_hh_o, preferred_element_type=jnp.float32))
        c_new = f * c + i * g
        h_new = o * jnp.tanh(c_new)
        return (h_new, c_new)

    h0 = jnp.zeros((B, H), jnp.float32)
    c0 = jnp.zeros((B, H), jnp.float32)
    # T is a static Python int -> fully unroll so the scheduler sees across steps.
    h_last, _ = jax.lax.fori_loop(0, T, step, (h0, c0), unroll=True)

    # dropout(p=0.0) is the identity; fc head fused as VPU mul + lane reduction
    # (avoids a 1-lane-wide MXU matmul + masked store at the kernel tail).
    out_ref[...] = (jnp.sum(h_last * w_fc_ref[...], axis=-1, keepdims=True)
                    + b_fc_ref[...])


def simple_lstm_forward(x, params):
    """x: (B, T, 1) float32  ->  (B,) float32  (matches SimpleLSTM.forward)."""
    B, T, _ = x.shape
    H = params["w_hh_g"].shape[1]
    x_tb = jnp.transpose(x[:, :, 0])      # (T, B) time-major, trailing 1 dropped

    out = pl.pallas_call(
        lstm_fc_kernel,
        out_shape=jax.ShapeDtypeStruct((B, 1), jnp.float32),
        in_specs=[pl.BlockSpec(memory_space=pltpu.MemorySpace.VMEM)] * 6,
        out_specs=pl.BlockSpec(memory_space=pltpu.MemorySpace.VMEM),
        scratch_shapes=[pltpu.VMEM((T, B, H), jnp.float32)] * 4,
    )(x_tb, params["w_ih_g"], params["w_hh_g"], params["b_g"],
      params["w_fc"], params["b_fc"])
    return out[:, 0]


def init_params(key, hidden_size=32):
    """Deterministic parameter init mirroring torch shapes (U(-1/sqrt(H), 1/sqrt(H)))."""
    H = hidden_size
    k = 1.0 / jnp.sqrt(jnp.float32(H))
    ks = jax.random.split(key, 6)
    w_ih = jax.random.uniform(ks[0], (4 * H, 1), jnp.float32, -k, k)   # torch weight_ih_l0
    w_hh = jax.random.uniform(ks[1], (4 * H, H), jnp.float32, -k, k)   # torch weight_hh_l0
    b_ih = jax.random.uniform(ks[2], (4 * H,), jnp.float32, -k, k)     # torch bias_ih_l0
    b_hh = jax.random.uniform(ks[3], (4 * H,), jnp.float32, -k, k)     # torch bias_hh_l0
    w_fc = jax.random.uniform(ks[4], (1, H), jnp.float32, -k, k)       # torch fc.weight
    b_fc = jax.random.uniform(ks[5], (1,), jnp.float32, -k, k)         # torch fc.bias
    return {
        "w_ih_g": w_ih.reshape(4, H),                        # (4, H): per-gate input weight (input_size==1)
        "w_hh_g": w_hh.reshape(4, H, H).transpose(0, 2, 1),  # (4, H, H): h @ w_hh_g[g]
        "b_g": (b_ih + b_hh).reshape(4, H),                  # (4, H): combined bias per gate
        "w_fc": w_fc,                                        # (1, H): fc as row vector (VPU mul + reduce)
        "b_fc": b_fc[None, :],                               # (1, 1)
    }


def reference_forward(x, params):
    """Pure-JAX reference of the same math (for a correctness sanity check)."""
    B, T, _ = x.shape
    H = params["w_hh_g"].shape[1]
    w_ih_g, w_hh_g, b_g = params["w_ih_g"], params["w_hh_g"], params["b_g"]
    h = jnp.zeros((B, H), jnp.float32)
    c = jnp.zeros((B, H), jnp.float32)
    for t in range(T):
        x_t = x[:, t, :]                                        # (B, 1)
        i = jax.nn.sigmoid(x_t * w_ih_g[0] + h @ w_hh_g[0] + b_g[0])
        f = jax.nn.sigmoid(x_t * w_ih_g[1] + h @ w_hh_g[1] + b_g[1])
        g = jnp.tanh(x_t * w_ih_g[2] + h @ w_hh_g[2] + b_g[2])
        o = jax.nn.sigmoid(x_t * w_ih_g[3] + h @ w_hh_g[3] + b_g[3])
        c = f * c + i * g
        h = o * jnp.tanh(c)
    return jnp.sum(h * params["w_fc"], axis=-1) + params["b_fc"][0, 0]


if __name__ == "__main__":
    key = jax.random.PRNGKey(0)
    k_x, k_p = jax.random.split(key)

    B, T, H = 2, 8, 32                     # batch, lookback, hidden_size
    x = jax.random.normal(k_x, (B, T, 1), jnp.float32)
    params = init_params(k_p, hidden_size=H)

    y = simple_lstm_forward(x, params)
    y = jax.block_until_ready(y)

    y_ref = reference_forward(x, params)
    assert y.shape == (B,)
    assert jnp.allclose(y, y_ref, atol=1e-5, rtol=1e-5), (y, y_ref)

    print("KERNEL_OK")
</pallas_src>

<mosaic_0001>
module attributes {stable_mosaic.version = 11 : i64} {
  func.func @lstm_fc_kernel(%arg0: memref<8x2xf32, #tpu.memory_space<vmem>>, %arg1: memref<4x32xf32, #tpu.memory_space<vmem>>, %arg2: memref<4x32x32xf32, #tpu.memory_space<vmem>>, %arg3: memref<4x32xf32, #tpu.memory_space<vmem>>, %arg4: memref<1x32xf32, #tpu.memory_space<vmem>>, %arg5: memref<1x1xf32, #tpu.memory_space<vmem>>, %arg6: memref<2x1xf32, #tpu.memory_space<vmem>>, %arg7: memref<8x2x32xf32, #tpu.memory_space<vmem>>, %arg8: memref<8x2x32xf32, #tpu.memory_space<vmem>>, %arg9: memref<8x2x32xf32, #tpu.memory_space<vmem>>, %arg10: memref<8x2x32xf32, #tpu.memory_space<vmem>>) attributes {dimension_semantics = [], scalar_prefetch = 0 : i64, scratch_operands = 4 : i64, tpu.core_type = #tpu.core_type<tc>} {
    %c0 = arith.constant 0 : index
    %c0_0 = arith.constant 0 : index
    %0 = vector.load %arg0[%c0, %c0_0] : memref<8x2xf32, #tpu.memory_space<vmem>>, vector<8x2xf32>
    %1 = vector.shape_cast %0 : vector<8x2xf32> to vector<8x2x1xf32>
    %c0_1 = arith.constant 0 : index
    %c0_2 = arith.constant 0 : index
    %2 = vector.load %arg1[%c0_1, %c0_2] : memref<4x32xf32, #tpu.memory_space<vmem>>, vector<4x32xf32>
    %c0_3 = arith.constant 0 : index
    %c0_4 = arith.constant 0 : index
    %3 = vector.load %arg3[%c0_3, %c0_4] : memref<4x32xf32, #tpu.memory_space<vmem>>, vector<4x32xf32>
    %4 = vector.extract_strided_slice %2 {offsets = [0, 0], sizes = [1, 32], strides = [1, 1]} : vector<4x32xf32> to vector<1x32xf32>
    %5 = vector.shape_cast %4 : vector<1x32xf32> to vector<32xf32>
    %6 = vector.shape_cast %5 : vector<32xf32> to vector<1x1x32xf32>
    %7 = vector.broadcast %1 : vector<8x2x1xf32> to vector<8x2x32xf32>
    %8 = vector.broadcast %6 : vector<1x1x32xf32> to vector<8x2x32xf32>
    %9 = arith.mulf %7, %8 : vector<8x2x32xf32>
    %10 = vector.extract_strided_slice %3 {offsets = [0, 0], sizes = [1, 32], strides = [1, 1]} : vector<4x32xf32> to vector<1x32xf32>
    %11 = vector.shape_cast %10 : vector<1x32xf32> to vector<32xf32>
    %12 = vector.shape_cast %11 : vector<32xf32> to vector<1x1x32xf32>
    %13 = vector.broadcast %12 : vector<1x1x32xf32> to vector<8x2x32xf32>
    %14 = arith.addf %9, %13 : vector<8x2x32xf32>
    %c0_5 = arith.constant 0 : index
    %c0_6 = arith.constant 0 : index
    %c0_7 = arith.constant 0 : index
    %15 = vector.load %arg7[%c0_5, %c0_6, %c0_7] : memref<8x2x32xf32, #tpu.memory_space<vmem>>, vector<8x2x32xf32>
    tpu.vector_store %arg7[%c0_5, %c0_6, %c0_7], %14 {strides = array<i32>} : memref<8x2x32xf32, #tpu.memory_space<vmem>>, vector<8x2x32xf32>,
    %16 = vector.extract_strided_slice %2 {offsets = [1, 0], sizes = [1, 32], strides = [1, 1]} : vector<4x32xf32> to vector<1x32xf32>
    %17 = vector.shape_cast %16 : vector<1x32xf32> to vector<32xf32>
    %18 = vector.shape_cast %17 : vector<32xf32> to vector<1x1x32xf32>
    %19 = vector.broadcast %1 : vector<8x2x1xf32> to vector<8x2x32xf32>
    %20 = vector.broadcast %18 : vector<1x1x32xf32> to vector<8x2x32xf32>
    %21 = arith.mulf %19, %20 : vector<8x2x32xf32>
    %22 = vector.extract_strided_slice %3 {offsets = [1, 0], sizes = [1, 32], strides = [1, 1]} : vector<4x32xf32> to vector<1x32xf32>
    %23 = vector.shape_cast %22 : vector<1x32xf32> to vector<32xf32>
    %24 = vector.shape_cast %23 : vector<32xf32> to vector<1x1x32xf32>
    %25 = vector.broadcast %24 : vector<1x1x32xf32> to vector<8x2x32xf32>
    %26 = arith.addf %21, %25 : vector<8x2x32xf32>
    %c0_8 = arith.constant 0 : index
    %c0_9 = arith.constant 0 : index
    %c0_10 = arith.constant 0 : index
    %27 = vector.load %arg8[%c0_8, %c0_9, %c0_10] : memref<8x2x32xf32, #tpu.memory_space<vmem>>, vector<8x2x32xf32>
    tpu.vector_store %arg8[%c0_8, %c0_9, %c0_10], %26 {strides = array<i32>} : memref<8x2x32xf32, #tpu.memory_space<vmem>>, vector<8x2x32xf32>,
    %28 = vector.extract_strided_slice %2 {offsets = [2, 0], sizes = [1, 32], strides = [1, 1]} : vector<4x32xf32> to vector<1x32xf32>
    %29 = vector.shape_cast %28 : vector<1x32xf32> to vector<32xf32>
    %30 = vector.shape_cast %29 : vector<32xf32> to vector<1x1x32xf32>
    %31 = vector.broadcast %1 : vector<8x2x1xf32> to vector<8x2x32xf32>
    %32 = vector.broadcast %30 : vector<1x1x32xf32> to vector<8x2x32xf32>
    %33 = arith.mulf %31, %32 : vector<8x2x32xf32>
    %34 = vector.extract_strided_slice %3 {offsets = [2, 0], sizes = [1, 32], strides = [1, 1]} : vector<4x32xf32> to vector<1x32xf32>
    %35 = vector.shape_cast %34 : vector<1x32xf32> to vector<32xf32>
    %36 = vector.shape_cast %35 : vector<32xf32> to vector<1x1x32xf32>
    %37 = vector.broadcast %36 : vector<1x1x32xf32> to vector<8x2x32xf32>
    %38 = arith.addf %33, %37 : vector<8x2x32xf32>
    %c0_11 = arith.constant 0 : index
    %c0_12 = arith.constant 0 : index
    %c0_13 = arith.constant 0 : index
    %39 = vector.load %arg9[%c0_11, %c0_12, %c0_13] : memref<8x2x32xf32, #tpu.memory_space<vmem>>, vector<8x2x32xf32>
    tpu.vector_store %arg9[%c0_11, %c0_12, %c0_13], %38 {strides = array<i32>} : memref<8x2x32xf32, #tpu.memory_space<vmem>>, vector<8x2x32xf32>,
    %40 = vector.extract_strided_slice %2 {offsets = [3, 0], sizes = [1, 32], strides = [1, 1]} : vector<4x32xf32> to vector<1x32xf32>
    %41 = vector.shape_cast %40 : vector<1x32xf32> to vector<32xf32>
    %42 = vector.shape_cast %41 : vector<32xf32> to vector<1x1x32xf32>
    %43 = vector.broadcast %1 : vector<8x2x1xf32> to vector<8x2x32xf32>
    %44 = vector.broadcast %42 : vector<1x1x32xf32> to vector<8x2x32xf32>
    %45 = arith.mulf %43, %44 : vector<8x2x32xf32>
    %46 = vector.extract_strided_slice %3 {offsets = [3, 0], sizes = [1, 32], strides = [1, 1]} : vector<4x32xf32> to vector<1x32xf32>
    %47 = vector.shape_cast %46 : vector<1x32xf32> to vector<32xf32>
    %48 = vector.shape_cast %47 : vector<32xf32> to vector<1x1x32xf32>
    %49 = vector.broadcast %48 : vector<1x1x32xf32> to vector<8x2x32xf32>
    %50 = arith.addf %45, %49 : vector<8x2x32xf32>
    %c0_14 = arith.constant 0 : index
    %c0_15 = arith.constant 0 : index
    %c0_16 = arith.constant 0 : index
    %51 = vector.load %arg10[%c0_14, %c0_15, %c0_16] : memref<8x2x32xf32, #tpu.memory_space<vmem>>, vector<8x2x32xf32>
    tpu.vector_store %arg10[%c0_14, %c0_15, %c0_16], %50 {strides = array<i32>} : memref<8x2x32xf32, #tpu.memory_space<vmem>>, vector<8x2x32xf32>,
    %c0_17 = arith.constant 0 : index
    %c0_18 = arith.constant 0 : index
    %c0_19 = arith.constant 0 : index
    %52 = vector.load %arg2[%c0_17, %c0_18, %c0_19] : memref<4x32x32xf32, #tpu.memory_space<vmem>>, vector<1x32x32xf32>
    %53 = vector.shape_cast %52 : vector<1x32x32xf32> to vector<32x32xf32>
    %c1 = arith.constant 1 : index
    %c0_20 = arith.constant 0 : index
    %c0_21 = arith.constant 0 : index
    %54 = vector.load %arg2[%c1, %c0_20, %c0_21] : memref<4x32x32xf32, #tpu.memory_space<vmem>>, vector<1x32x32xf32>
    %55 = vector.shape_cast %54 : vector<1x32x32xf32> to vector<32x32xf32>
    %c2 = arith.constant 2 : index
    %c0_22 = arith.constant 0 : index
    %c0_23 = arith.constant 0 : index
    %56 = vector.load %arg2[%c2, %c0_22, %c0_23] : memref<4x32x32xf32, #tpu.memory_space<vmem>>, vector<1x32x32xf32>
    %57 = vector.shape_cast %56 : vector<1x32x32xf32> to vector<32x32xf32>
    %c3 = arith.constant 3 : index
    %c0_24 = arith.constant 0 : index
    %c0_25 = arith.constant 0 : index
    %58 = vector.load %arg2[%c3, %c0_24, %c0_25] : memref<4x32x32xf32, #tpu.memory_space<vmem>>, vector<1x32x32xf32>
    %59 = vector.shape_cast %58 : vector<1x32x32xf32> to vector<32x32xf32>
    %cst = arith.constant 0.000000e+00 : f32
    %60 = vector.broadcast %cst : f32 to vector<2x32xf32>
    %cst_26 = arith.constant 0.000000e+00 : f32
    %61 = vector.broadcast %cst_26 : f32 to vector<2x32xf32>
    %c0_i32 = arith.constant 0 : i32
    %62 = arith.index_cast %c0_i32 : i32 to index
    %c0_27 = arith.constant 0 : index
    %c0_28 = arith.constant 0 : index
    %63 = vector.load %arg7[%62, %c0_27, %c0_28] : memref<8x2x32xf32, #tpu.memory_space<vmem>>, vector<1x2x32xf32>
    %64 = vector.shape_cast %63 : vector<1x2x32xf32> to vector<2x32xf32>
    %cst_29 = arith.constant dense<0.000000e+00> : vector<2x32xf32>
    %65 = tpu.matmul %60, %53, %cst_29 {dimension_numbers = #tpu.dot_dimension_numbers<[1], [0], [0], [1], [0, 0, 1, 1], [], []>} : vector<2x32xf32>, vector<32x32xf32>, vector<2x32xf32> -> vector<2x32xf32>
    %66 = arith.addf %64, %65 : vector<2x32xf32>
    %67 = arith.negf %66 : vector<2x32xf32>
    %68 = math.exp %67 : vector<2x32xf32>
    %cst_30 = arith.constant 1.000000e+00 : f32
    %69 = vector.broadcast %cst_30 : f32 to vector<2x32xf32>
    %70 = arith.addf %69, %68 : vector<2x32xf32>
    %71 = arith.divf %69, %70 : vector<2x32xf32>
    %72 = arith.index_cast %c0_i32 : i32 to index
    %c0_31 = arith.constant 0 : index
    %c0_32 = arith.constant 0 : index
    %73 = vector.load %arg8[%72, %c0_31, %c0_32] : memref<8x2x32xf32, #tpu.memory_space<vmem>>, vector<1x2x32xf32>
    %74 = vector.shape_cast %73 : vector<1x2x32xf32> to vector<2x32xf32>
    %cst_33 = arith.constant dense<0.000000e+00> : vector<2x32xf32>
    %75 = tpu.matmul %60, %55, %cst_33 {dimension_numbers = #tpu.dot_dimension_numbers<[1], [0], [0], [1], [0, 0, 1, 1], [], []>} : vector<2x32xf32>, vector<32x32xf32>, vector<2x32xf32> -> vector<2x32xf32>
    %76 = arith.addf %74, %75 : vector<2x32xf32>
    %77 = arith.negf %76 : vector<2x32xf32>
    %78 = math.exp %77 : vector<2x32xf32>
    %cst_34 = arith.constant 1.000000e+00 : f32
    %79 = vector.broadcast %cst_34 : f32 to vector<2x32xf32>
    %80 = arith.addf %79, %78 : vector<2x32xf32>
    %81 = arith.divf %79, %80 : vector<2x32xf32>
    %82 = arith.index_cast %c0_i32 : i32 to index
    %c0_35 = arith.constant 0 : index
    %c0_36 = arith.constant 0 : index
    %83 = vector.load %arg9[%82, %c0_35, %c0_36] : memref<8x2x32xf32, #tpu.memory_space<vmem>>, vector<1x2x32xf32>
    %84 = vector.shape_cast %83 : vector<1x2x32xf32> to vector<2x32xf32>
    %cst_37 = arith.constant dense<0.000000e+00> : vector<2x32xf32>
    %85 = tpu.matmul %60, %57, %cst_37 {dimension_numbers = #tpu.dot_dimension_numbers<[1], [0], [0], [1], [0, 0, 1, 1], [], []>} : vector<2x32xf32>, vector<32x32xf32>, vector<2x32xf32> -> vector<2x32xf32>
    %86 = arith.addf %84, %85 : vector<2x32xf32>
    %87 = math.tanh %86 : vector<2x32xf32>
    %88 = arith.index_cast %c0_i32 : i32 to index
    %c0_38 = arith.constant 0 : index
    %c0_39 = arith.constant 0 : index
    %89 = vector.load %arg10[%88, %c0_38, %c0_39] : memref<8x2x32xf32, #tpu.memory_space<vmem>>, vector<1x2x32xf32>
    %90 = vector.shape_cast %89 : vector<1x2x32xf32> to vector<2x32xf32>
    %cst_40 = arith.constant dense<0.000000e+00> : vector<2x32xf32>
    %91 = tpu.matmul %60, %59, %cst_40 {dimension_numbers = #tpu.dot_dimension_numbers<[1], [0], [0], [1], [0, 0, 1, 1], [], []>} : vector<2x32xf32>, vector<32x32xf32>, vector<2x32xf32> -> vector<2x32xf32>
    %92 = arith.addf %90, %91 : vector<2x32xf32>
    %93 = arith.negf %92 : vector<2x32xf32>
    %94 = math.exp %93 : vector<2x32xf32>
    %cst_41 = arith.constant 1.000000e+00 : f32
    %95 = vector.broadcast %cst_41 : f32 to vector<2x32xf32>
    %96 = arith.addf %95, %94 : vector<2x32xf32>
    %97 = arith.divf %95, %96 : vector<2x32xf32>
    %98 = arith.mulf %81, %61 : vector<2x32xf32>
    %99 = arith.mulf %71, %87 : vector<2x32xf32>
    %100 = arith.addf %98, %99 : vector<2x32xf32>
    %101 = math.tanh %100 : vector<2x32xf32>
    %102 = arith.mulf %97, %101 : vector<2x32xf32>
    %c1_i32 = arith.constant 1 : i32
    %103 = arith.index_cast %c1_i32 : i32 to index
    %c0_42 = arith.constant 0 : index
    %c0_43 = arith.constant 0 : index
    %104 = vector.load %arg7[%103, %c0_42, %c0_43] : memref<8x2x32xf32, #tpu.memory_space<vmem>>, vector<1x2x32xf32>
    %105 = vector.shape_cast %104 : vector<1x2x32xf32> to vector<2x32xf32>
    %cst_44 = arith.constant dense<0.000000e+00> : vector<2x32xf32>
    %106 = tpu.matmul %102, %53, %cst_44 {dimension_numbers = #tpu.dot_dimension_numbers<[1], [0], [0], [1], [0, 0, 1, 1], [], []>} : vector<2x32xf32>, vector<32x32xf32>, vector<2x32xf32> -> vector<2x32xf32>
    %107 = arith.addf %105, %106 : vector<2x32xf32>
    %108 = arith.negf %107 : vector<2x32xf32>
    %109 = math.exp %108 : vector<2x32xf32>
    %cst_45 = arith.constant 1.000000e+00 : f32
    %110 = vector.broadcast %cst_45 : f32 to vector<2x32xf32>
    %111 = arith.addf %110, %109 : vector<2x32xf32>
    %112 = arith.divf %110, %111 : vector<2x32xf32>
    %113 = arith.index_cast %c1_i32 : i32 to index
    %c0_46 = arith.constant 0 : index
    %c0_47 = arith.constant 0 : index
    %114 = vector.load %arg8[%113, %c0_46, %c0_47] : memref<8x2x32xf32, #tpu.memory_space<vmem>>, vector<1x2x32xf32>
    %115 = vector.shape_cast %114 : vector<1x2x32xf32> to vector<2x32xf32>
    %cst_48 = arith.constant dense<0.000000e+00> : vector<2x32xf32>
    %116 = tpu.matmul %102, %55, %cst_48 {dimension_numbers = #tpu.dot_dimension_numbers<[1], [0], [0], [1], [0, 0, 1, 1], [], []>} : vector<2x32xf32>, vector<32x32xf32>, vector<2x32xf32> -> vector<2x32xf32>
    %117 = arith.addf %115, %116 : vector<2x32xf32>
    %118 = arith.negf %117 : vector<2x32xf32>
    %119 = math.exp %118 : vector<2x32xf32>
    %cst_49 = arith.constant 1.000000e+00 : f32
    %120 = vector.broadcast %cst_49 : f32 to vector<2x32xf32>
    %121 = arith.addf %120, %119 : vector<2x32xf32>
    %122 = arith.divf %120, %121 : vector<2x32xf32>
    %123 = arith.index_cast %c1_i32 : i32 to index
    %c0_50 = arith.constant 0 : index
    %c0_51 = arith.constant 0 : index
    %124 = vector.load %arg9[%123, %c0_50, %c0_51] : memref<8x2x32xf32, #tpu.memory_space<vmem>>, vector<1x2x32xf32>
    %125 = vector.shape_cast %124 : vector<1x2x32xf32> to vector<2x32xf32>
    %cst_52 = arith.constant dense<0.000000e+00> : vector<2x32xf32>
    %126 = tpu.matmul %102, %57, %cst_52 {dimension_numbers = #tpu.dot_dimension_numbers<[1], [0], [0], [1], [0, 0, 1, 1], [], []>} : vector<2x32xf32>, vector<32x32xf32>, vector<2x32xf32> -> vector<2x32xf32>
    %127 = arith.addf %125, %126 : vector<2x32xf32>
    %128 = math.tanh %127 : vector<2x32xf32>
    %129 = arith.index_cast %c1_i32 : i32 to index
    %c0_53 = arith.constant 0 : index
    %c0_54 = arith.constant 0 : index
    %130 = vector.load %arg10[%129, %c0_53, %c0_54] : memref<8x2x32xf32, #tpu.memory_space<vmem>>, vector<1x2x32xf32>
    %131 = vector.shape_cast %130 : vector<1x2x32xf32> to vector<2x32xf32>
    %cst_55 = arith.constant dense<0.000000e+00> : vector<2x32xf32>
    %132 = tpu.matmul %102, %59, %cst_55 {dimension_numbers = #tpu.dot_dimension_numbers<[1], [0], [0], [1], [0, 0, 1, 1], [], []>} : vector<2x32xf32>, vector<32x32xf32>, vector<2x32xf32> -> vector<2x32xf32>
    %133 = arith.addf %131, %132 : vector<2x32xf32>
    %134 = arith.negf %133 : vector<2x32xf32>
    %135 = math.exp %134 : vector<2x32xf32>
    %cst_56 = arith.constant 1.000000e+00 : f32
    %136 = vector.broadcast %cst_56 : f32 to vector<2x32xf32>
    %137 = arith.addf %136, %135 : vector<2x32xf32>
    %138 = arith.divf %136, %137 : vector<2x32xf32>
    %139 = arith.mulf %122, %100 : vector<2x32xf32>
    %140 = arith.mulf %112, %128 : vector<2x32xf32>
    %141 = arith.addf %139, %140 : vector<2x32xf32>
    %142 = math.tanh %141 : vector<2x32xf32>
    %143 = arith.mulf %138, %142 : vector<2x32xf32>
    %c2_i32 = arith.constant 2 : i32
    %144 = arith.index_cast %c2_i32 : i32 to index
    %c0_57 = arith.constant 0 : index
    %c0_58 = arith.constant 0 : index
    %145 = vector.load %arg7[%144, %c0_57, %c0_58] : memref<8x2x32xf32, #tpu.memory_space<vmem>>, vector<1x2x32xf32>
    %146 = vector.shape_cast %145 : vector<1x2x32xf32> to vector<2x32xf32>
    %cst_59 = arith.constant dense<0.000000e+00> : vector<2x32xf32>
    %147 = tpu.matmul %143, %53, %cst_59 {dimension_numbers = #tpu.dot_dimension_numbers<[1], [0], [0], [1], [0, 0, 1, 1], [], []>} : vector<2x32xf32>, vector<32x32xf32>, vector<2x32xf32> -> vector<2x32xf32>
    %148 = arith.addf %146, %147 : vector<2x32xf32>
    %149 = arith.negf %148 : vector<2x32xf32>
    %150 = math.exp %149 : vector<2x32xf32>
    %cst_60 = arith.constant 1.000000e+00 : f32
    %151 = vector.broadcast %cst_60 : f32 to vector<2x32xf32>
    %152 = arith.addf %151, %150 : vector<2x32xf32>
    %153 = arith.divf %151, %152 : vector<2x32xf32>
    %154 = arith.index_cast %c2_i32 : i32 to index
    %c0_61 = arith.constant 0 : index
    %c0_62 = arith.constant 0 : index
    %155 = vector.load %arg8[%154, %c0_61, %c0_62] : memref<8x2x32xf32, #tpu.memory_space<vmem>>, vector<1x2x32xf32>
    %156 = vector.shape_cast %155 : vector<1x2x32xf32> to vector<2x32xf32>
    %cst_63 = arith.constant dense<0.000000e+00> : vector<2x32xf32>
    %157 = tpu.matmul %143, %55, %cst_63 {dimension_numbers = #tpu.dot_dimension_numbers<[1], [0], [0], [1], [0, 0, 1, 1], [], []>} : vector<2x32xf32>, vector<32x32xf32>, vector<2x32xf32> -> vector<2x32xf32>
    %158 = arith.addf %156, %157 : vector<2x32xf32>
    %159 = arith.negf %158 : vector<2x32xf32>
    %160 = math.exp %159 : vector<2x32xf32>
    %cst_64 = arith.constant 1.000000e+00 : f32
    %161 = vector.broadcast %cst_64 : f32 to vector<2x32xf32>
    %162 = arith.addf %161, %160 : vector<2x32xf32>
    %163 = arith.divf %161, %162 : vector<2x32xf32>
    %164 = arith.index_cast %c2_i32 : i32 to index
    %c0_65 = arith.constant 0 : index
    %c0_66 = arith.constant 0 : index
    %165 = vector.load %arg9[%164, %c0_65, %c0_66] : memref<8x2x32xf32, #tpu.memory_space<vmem>>, vector<1x2x32xf32>
    %166 = vector.shape_cast %165 : vector<1x2x32xf32> to vector<2x32xf32>
    %cst_67 = arith.constant dense<0.000000e+00> : vector<2x32xf32>
    %167 = tpu.matmul %143, %57, %cst_67 {dimension_numbers = #tpu.dot_dimension_numbers<[1], [0], [0], [1], [0, 0, 1, 1], [], []>} : vector<2x32xf32>, vector<32x32xf32>, vector<2x32xf32> -> vector<2x32xf32>
    %168 = arith.addf %166, %167 : vector<2x32xf32>
    %169 = math.tanh %168 : vector<2x32xf32>
    %170 = arith.index_cast %c2_i32 : i32 to index
    %c0_68 = arith.constant 0 : index
    %c0_69 = arith.constant 0 : index
    %171 = vector.load %arg10[%170, %c0_68, %c0_69] : memref<8x2x32xf32, #tpu.memory_space<vmem>>, vector<1x2x32xf32>
    %172 = vector.shape_cast %171 : vector<1x2x32xf32> to vector<2x32xf32>
    %cst_70 = arith.constant dense<0.000000e+00> : vector<2x32xf32>
    %173 = tpu.matmul %143, %59, %cst_70 {dimension_numbers = #tpu.dot_dimension_numbers<[1], [0], [0], [1], [0, 0, 1, 1], [], []>} : vector<2x32xf32>, vector<32x32xf32>, vector<2x32xf32> -> vector<2x32xf32>
    %174 = arith.addf %172, %173 : vector<2x32xf32>
    %175 = arith.negf %174 : vector<2x32xf32>
    %176 = math.exp %175 : vector<2x32xf32>
    %cst_71 = arith.constant 1.000000e+00 : f32
    %177 = vector.broadcast %cst_71 : f32 to vector<2x32xf32>
    %178 = arith.addf %177, %176 : vector<2x32xf32>
    %179 = arith.divf %177, %178 : vector<2x32xf32>
    %180 = arith.mulf %163, %141 : vector<2x32xf32>
    %181 = arith.mulf %153, %169 : vector<2x32xf32>
    %182 = arith.addf %180, %181 : vector<2x32xf32>
    %183 = math.tanh %182 : vector<2x32xf32>
    %184 = arith.mulf %179, %183 : vector<2x32xf32>
    %c3_i32 = arith.constant 3 : i32
    %185 = arith.index_cast %c3_i32 : i32 to index
    %c0_72 = arith.constant 0 : index
    %c0_73 = arith.constant 0 : index
    %186 = vector.load %arg7[%185, %c0_72, %c0_73] : memref<8x2x32xf32, #tpu.memory_space<vmem>>, vector<1x2x32xf32>
    %187 = vector.shape_cast %186 : vector<1x2x32xf32> to vector<2x32xf32>
    %cst_74 = arith.constant dense<0.000000e+00> : vector<2x32xf32>
    %188 = tpu.matmul %184, %53, %cst_74 {dimension_numbers = #tpu.dot_dimension_numbers<[1], [0], [0], [1], [0, 0, 1, 1], [], []>} : vector<2x32xf32>, vector<32x32xf32>, vector<2x32xf32> -> vector<2x32xf32>
    %189 = arith.addf %187, %188 : vector<2x32xf32>
    %190 = arith.negf %189 : vector<2x32xf32>
    %191 = math.exp %190 : vector<2x32xf32>
    %cst_75 = arith.constant 1.000000e+00 : f32
    %192 = vector.broadcast %cst_75 : f32 to vector<2x32xf32>
    %193 = arith.addf %192, %191 : vector<2x32xf32>
    %194 = arith.divf %192, %193 : vector<2x32xf32>
    %195 = arith.index_cast %c3_i32 : i32 to index
    %c0_76 = arith.constant 0 : index
    %c0_77 = arith.constant 0 : index
    %196 = vector.load %arg8[%195, %c0_76, %c0_77] : memref<8x2x32xf32, #tpu.memory_space<vmem>>, vector<1x2x32xf32>
    %197 = vector.shape_cast %196 : vector<1x2x32xf32> to vector<2x32xf32>
    %cst_78 = arith.constant dense<0.000000e+00> : vector<2x32xf32>
    %198 = tpu.matmul %184, %55, %cst_78 {dimension_numbers = #tpu.dot_dimension_numbers<[1], [0], [0], [1], [0, 0, 1, 1], [], []>} : vector<2x32xf32>, vector<32x32xf32>, vector<2x32xf32> -> vector<2x32xf32>
    %199 = arith.addf %197, %198 : vector<2x32xf32>
    %200 = arith.negf %199 : vector<2x32xf32>
    %201 = math.exp %200 : vector<2x32xf32>
    %cst_79 = arith.constant 1.000000e+00 : f32
    %202 = vector.broadcast %cst_79 : f32 to vector<2x32xf32>
    %203 = arith.addf %202, %201 : vector<2x32xf32>
    %204 = arith.divf %202, %203 : vector<2x32xf32>
    %205 = arith.index_cast %c3_i32 : i32 to index
    %c0_80 = arith.constant 0 : index
    %c0_81 = arith.constant 0 : index
    %206 = vector.load %arg9[%205, %c0_80, %c0_81] : memref<8x2x32xf32, #tpu.memory_space<vmem>>, vector<1x2x32xf32>
    %207 = vector.shape_cast %206 : vector<1x2x32xf32> to vector<2x32xf32>
    %cst_82 = arith.constant dense<0.000000e+00> : vector<2x32xf32>
    %208 = tpu.matmul %184, %57, %cst_82 {dimension_numbers = #tpu.dot_dimension_numbers<[1], [0], [0], [1], [0, 0, 1, 1], [], []>} : vector<2x32xf32>, vector<32x32xf32>, vector<2x32xf32> -> vector<2x32xf32>
    %209 = arith.addf %207, %208 : vector<2x32xf32>
    %210 = math.tanh %209 : vector<2x32xf32>
    %211 = arith.index_cast %c3_i32 : i32 to index
    %c0_83 = arith.constant 0 : index
    %c0_84 = arith.constant 0 : index
    %212 = vector.load %arg10[%211, %c0_83, %c0_84] : memref<8x2x32xf32, #tpu.memory_space<vmem>>, vector<1x2x32xf32>
    %213 = vector.shape_cast %212 : vector<1x2x32xf32> to vector<2x32xf32>
    %cst_85 = arith.constant dense<0.000000e+00> : vector<2x32xf32>
    %214 = tpu.matmul %184, %59, %cst_85 {dimension_numbers = #tpu.dot_dimension_numbers<[1], [0], [0], [1], [0, 0, 1, 1], [], []>} : vector<2x32xf32>, vector<32x32xf32>, vector<2x32xf32> -> vector<2x32xf32>
    %215 = arith.addf %213, %214 : vector<2x32xf32>
    %216 = arith.negf %215 : vector<2x32xf32>
    %217 = math.exp %216 : vector<2x32xf32>
    %cst_86 = arith.constant 1.000000e+00 : f32
    %218 = vector.broadcast %cst_86 : f32 to vector<2x32xf32>
    %219 = arith.addf %218, %217 : vector<2x32xf32>
    %220 = arith.divf %218, %219 : vector<2x32xf32>
    %221 = arith.mulf %204, %182 : vector<2x32xf32>
    %222 = arith.mulf %194, %210 : vector<2x32xf32>
    %223 = arith.addf %221, %222 : vector<2x32xf32>
    %224 = math.tanh %223 : vector<2x32xf32>
    %225 = arith.mulf %220, %224 : vector<2x32xf32>
    %c4_i32 = arith.constant 4 : i32
    %226 = arith.index_cast %c4_i32 : i32 to index
    %c0_87 = arith.constant 0 : index
    %c0_88 = arith.constant 0 : index
    %227 = vector.load %arg7[%226, %c0_87, %c0_88] : memref<8x2x32xf32, #tpu.memory_space<vmem>>, vector<1x2x32xf32>
    %228 = vector.shape_cast %227 : vector<1x2x32xf32> to vector<2x32xf32>
    %cst_89 = arith.constant dense<0.000000e+00> : vector<2x32xf32>
    %229 = tpu.matmul %225, %53, %cst_89 {dimension_numbers = #tpu.dot_dimension_numbers<[1], [0], [0], [1], [0, 0, 1, 1], [], []>} : vector<2x32xf32>, vector<32x32xf32>, vector<2x32xf32> -> vector<2x32xf32>
    %230 = arith.addf %228, %229 : vector<2x32xf32>
    %231 = arith.negf %230 : vector<2x32xf32>
    %232 = math.exp %231 : vector<2x32xf32>
    %cst_90 = arith.constant 1.000000e+00 : f32
    %233 = vector.broadcast %cst_90 : f32 to vector<2x32xf32>
    %234 = arith.addf %233, %232 : vector<2x32xf32>
    %235 = arith.divf %233, %234 : vector<2x32xf32>
    %236 = arith.index_cast %c4_i32 : i32 to index
    %c0_91 = arith.constant 0 : index
    %c0_92 = arith.constant 0 : index
    %237 = vector.load %arg8[%236, %c0_91, %c0_92] : memref<8x2x32xf32, #tpu.memory_space<vmem>>, vector<1x2x32xf32>
    %238 = vector.shape_cast %237 : vector<1x2x32xf32> to vector<2x32xf32>
    %cst_93 = arith.constant dense<0.000000e+00> : vector<2x32xf32>
    %239 = tpu.matmul %225, %55, %cst_93 {dimension_numbers = #tpu.dot_dimension_numbers<[1], [0], [0], [1], [0, 0, 1, 1], [], []>} : vector<2x32xf32>, vector<32x32xf32>, vector<2x32xf32> -> vector<2x32xf32>
    %240 = arith.addf %238, %239 : vector<2x32xf32>
    %241 = arith.negf %240 : vector<2x32xf32>
    %242 = math.exp %241 : vector<2x32xf32>
    %cst_94 = arith.constant 1.000000e+00 : f32
    %243 = vector.broadcast %cst_94 : f32 to vector<2x32xf32>
    %244 = arith.addf %243, %242 : vector<2x32xf32>
    %245 = arith.divf %243, %244 : vector<2x32xf32>
    %246 = arith.index_cast %c4_i32 : i32 to index
    %c0_95 = arith.constant 0 : index
    %c0_96 = arith.constant 0 : index
    %247 = vector.load %arg9[%246, %c0_95, %c0_96] : memref<8x2x32xf32, #tpu.memory_space<vmem>>, vector<1x2x32xf32>
    %248 = vector.shape_cast %247 : vector<1x2x32xf32> to vector<2x32xf32>
    %cst_97 = arith.constant dense<0.000000e+00> : vector<2x32xf32>
    %249 = tpu.matmul %225, %57, %cst_97 {dimension_numbers = #tpu.dot_dimension_numbers<[1], [0], [0], [1], [0, 0, 1, 1], [], []>} : vector<2x32xf32>, vector<32x32xf32>, vector<2x32xf32> -> vector<2x32xf32>
    %250 = arith.addf %248, %249 : vector<2x32xf32>
    %251 = math.tanh %250 : vector<2x32xf32>
    %252 = arith.index_cast %c4_i32 : i32 to index
    %c0_98 = arith.constant 0 : index
    %c0_99 = arith.constant 0 : index
    %253 = vector.load %arg10[%252, %c0_98, %c0_99] : memref<8x2x32xf32, #tpu.memory_space<vmem>>, vector<1x2x32xf32>
    %254 = vector.shape_cast %253 : vector<1x2x32xf32> to vector<2x32xf32>
    %cst_100 = arith.constant dense<0.000000e+00> : vector<2x32xf32>
    %255 = tpu.matmul %225, %59, %cst_100 {dimension_numbers = #tpu.dot_dimension_numbers<[1], [0], [0], [1], [0, 0, 1, 1], [], []>} : vector<2x32xf32>, vector<32x32xf32>, vector<2x32xf32> -> vector<2x32xf32>
    %256 = arith.addf %254, %255 : vector<2x32xf32>
    %257 = arith.negf %256 : vector<2x32xf32>
    %258 = math.exp %257 : vector<2x32xf32>
    %cst_101 = arith.constant 1.000000e+00 : f32
    %259 = vector.broadcast %cst_101 : f32 to vector<2x32xf32>
    %260 = arith.addf %259, %258 : vector<2x32xf32>
    %261 = arith.divf %259, %260 : vector<2x32xf32>
    %262 = arith.mulf %245, %223 : vector<2x32xf32>
    %263 = arith.mulf %235, %251 : vector<2x32xf32>
    %264 = arith.addf %262, %263 : vector<2x32xf32>
    %265 = math.tanh %264 : vector<2x32xf32>
    %266 = arith.mulf %261, %265 : vector<2x32xf32>
    %c5_i32 = arith.constant 5 : i32
    %267 = arith.index_cast %c5_i32 : i32 to index
    %c0_102 = arith.constant 0 : index
    %c0_103 = arith.constant 0 : index
    %268 = vector.load %arg7[%267, %c0_102, %c0_103] : memref<8x2x32xf32, #tpu.memory_space<vmem>>, vector<1x2x32xf32>
    %269 = vector.shape_cast %268 : vector<1x2x32xf32> to vector<2x32xf32>
    %cst_104 = arith.constant dense<0.000000e+00> : vector<2x32xf32>
    %270 = tpu.matmul %266, %53, %cst_104 {dimension_numbers = #tpu.dot_dimension_numbers<[1], [0], [0], [1], [0, 0, 1, 1], [], []>} : vector<2x32xf32>, vector<32x32xf32>, vector<2x32xf32> -> vector<2x32xf32>
    %271 = arith.addf %269, %270 : vector<2x32xf32>
    %272 = arith.negf %271 : vector<2x32xf32>
    %273 = math.exp %272 : vector<2x32xf32>
    %cst_105 = arith.constant 1.000000e+00 : f32
    %274 = vector.broadcast %cst_105 : f32 to vector<2x32xf32>
    %275 = arith.addf %274, %273 : vector<2x32xf32>
    %276 = arith.divf %274, %275 : vector<2x32xf32>
    %277 = arith.index_cast %c5_i32 : i32 to index
    %c0_106 = arith.constant 0 : index
    %c0_107 = arith.constant 0 : index
    %278 = vector.load %arg8[%277, %c0_106, %c0_107] : memref<8x2x32xf32, #tpu.memory_space<vmem>>, vector<1x2x32xf32>
    %279 = vector.shape_cast %278 : vector<1x2x32xf32> to vector<2x32xf32>
    %cst_108 = arith.constant dense<0.000000e+00> : vector<2x32xf32>
    %280 = tpu.matmul %266, %55, %cst_108 {dimension_numbers = #tpu.dot_dimension_numbers<[1], [0], [0], [1], [0, 0, 1, 1], [], []>} : vector<2x32xf32>, vector<32x32xf32>, vector<2x32xf32> -> vector<2x32xf32>
    %281 = arith.addf %279, %280 : vector<2x32xf32>
    %282 = arith.negf %281 : vector<2x32xf32>
    %283 = math.exp %282 : vector<2x32xf32>
    %cst_109 = arith.constant 1.000000e+00 : f32
    %284 = vector.broadcast %cst_109 : f32 to vector<2x32xf32>
    %285 = arith.addf %284, %283 : vector<2x32xf32>
    %286 = arith.divf %284, %285 : vector<2x32xf32>
    %287 = arith.index_cast %c5_i32 : i32 to index
    %c0_110 = arith.constant 0 : index
    %c0_111 = arith.constant 0 : index
    %288 = vector.load %arg9[%287, %c0_110, %c0_111] : memref<8x2x32xf32, #tpu.memory_space<vmem>>, vector<1x2x32xf32>
    %289 = vector.shape_cast %288 : vector<1x2x32xf32> to vector<2x32xf32>
    %cst_112 = arith.constant dense<0.000000e+00> : vector<2x32xf32>
    %290 = tpu.matmul %266, %57, %cst_112 {dimension_numbers = #tpu.dot_dimension_numbers<[1], [0], [0], [1], [0, 0, 1, 1], [], []>} : vector<2x32xf32>, vector<32x32xf32>, vector<2x32xf32> -> vector<2x32xf32>
    %291 = arith.addf %289, %290 : vector<2x32xf32>
    %292 = math.tanh %291 : vector<2x32xf32>
    %293 = arith.index_cast %c5_i32 : i32 to index
    %c0_113 = arith.constant 0 : index
    %c0_114 = arith.constant 0 : index
    %294 = vector.load %arg10[%293, %c0_113, %c0_114] : memref<8x2x32xf32, #tpu.memory_space<vmem>>, vector<1x2x32xf32>
    %295 = vector.shape_cast %294 : vector<1x2x32xf32> to vector<2x32xf32>
    %cst_115 = arith.constant dense<0.000000e+00> : vector<2x32xf32>
    %296 = tpu.matmul %266, %59, %cst_115 {dimension_numbers = #tpu.dot_dimension_numbers<[1], [0], [0], [1], [0, 0, 1, 1], [], []>} : vector<2x32xf32>, vector<32x32xf32>, vector<2x32xf32> -> vector<2x32xf32>
    %297 = arith.addf %295, %296 : vector<2x32xf32>
    %298 = arith.negf %297 : vector<2x32xf32>
    %299 = math.exp %298 : vector<2x32xf32>
    %cst_116 = arith.constant 1.000000e+00 : f32
    %300 = vector.broadcast %cst_116 : f32 to vector<2x32xf32>
    %301 = arith.addf %300, %299 : vector<2x32xf32>
    %302 = arith.divf %300, %301 : vector<2x32xf32>
    %303 = arith.mulf %286, %264 : vector<2x32xf32>
    %304 = arith.mulf %276, %292 : vector<2x32xf32>
    %305 = arith.addf %303, %304 : vector<2x32xf32>
    %306 = math.tanh %305 : vector<2x32xf32>
    %307 = arith.mulf %302, %306 : vector<2x32xf32>
    %c6_i32 = arith.constant 6 : i32
    %308 = arith.index_cast %c6_i32 : i32 to index
    %c0_117 = arith.constant 0 : index
    %c0_118 = arith.constant 0 : index
    %309 = vector.load %arg7[%308, %c0_117, %c0_118] : memref<8x2x32xf32, #tpu.memory_space<vmem>>, vector<1x2x32xf32>
    %310 = vector.shape_cast %309 : vector<1x2x32xf32> to vector<2x32xf32>
    %cst_119 = arith.constant dense<0.000000e+00> : vector<2x32xf32>
    %311 = tpu.matmul %307, %53, %cst_119 {dimension_numbers = #tpu.dot_dimension_numbers<[1], [0], [0], [1], [0, 0, 1, 1], [], []>} : vector<2x32xf32>, vector<32x32xf32>, vector<2x32xf32> -> vector<2x32xf32>
    %312 = arith.addf %310, %311 : vector<2x32xf32>
    %313 = arith.negf %312 : vector<2x32xf32>
    %314 = math.exp %313 : vector<2x32xf32>
    %cst_120 = arith.constant 1.000000e+00 : f32
    %315 = vector.broadcast %cst_120 : f32 to vector<2x32xf32>
    %316 = arith.addf %315, %314 : vector<2x32xf32>
    %317 = arith.divf %315, %316 : vector<2x32xf32>
    %318 = arith.index_cast %c6_i32 : i32 to index
    %c0_121 = arith.constant 0 : index
    %c0_122 = arith.constant 0 : index
    %319 = vector.load %arg8[%318, %c0_121, %c0_122] : memref<8x2x32xf32, #tpu.memory_space<vmem>>, vector<1x2x32xf32>
    %320 = vector.shape_cast %319 : vector<1x2x32xf32> to vector<2x32xf32>
    %cst_123 = arith.constant dense<0.000000e+00> : vector<2x32xf32>
    %321 = tpu.matmul %307, %55, %cst_123 {dimension_numbers = #tpu.dot_dimension_numbers<[1], [0], [0], [1], [0, 0, 1, 1], [], []>} : vector<2x32xf32>, vector<32x32xf32>, vector<2x32xf32> -> vector<2x32xf32>
    %322 = arith.addf %320, %321 : vector<2x32xf32>
    %323 = arith.negf %322 : vector<2x32xf32>
    %324 = math.exp %323 : vector<2x32xf32>
    %cst_124 = arith.constant 1.000000e+00 : f32
    %325 = vector.broadcast %cst_124 : f32 to vector<2x32xf32>
    %326 = arith.addf %325, %324 : vector<2x32xf32>
    %327 = arith.divf %325, %326 : vector<2x32xf32>
    %328 = arith.index_cast %c6_i32 : i32 to index
    %c0_125 = arith.constant 0 : index
    %c0_126 = arith.constant 0 : index
    %329 = vector.load %arg9[%328, %c0_125, %c0_126] : memref<8x2x32xf32, #tpu.memory_space<vmem>>, vector<1x2x32xf32>
    %330 = vector.shape_cast %329 : vector<1x2x32xf32> to vector<2x32xf32>
    %cst_127 = arith.constant dense<0.000000e+00> : vector<2x32xf32>
    %331 = tpu.matmul %307, %57, %cst_127 {dimension_numbers = #tpu.dot_dimension_numbers<[1], [0], [0], [1], [0, 0, 1, 1], [], []>} : vector<2x32xf32>, vector<32x32xf32>, vector<2x32xf32> -> vector<2x32xf32>
    %332 = arith.addf %330, %331 : vector<2x32xf32>
    %333 = math.tanh %332 : vector<2x32xf32>
    %334 = arith.index_cast %c6_i32 : i32 to index
    %c0_128 = arith.constant 0 : index
    %c0_129 = arith.constant 0 : index
    %335 = vector.load %arg10[%334, %c0_128, %c0_129] : memref<8x2x32xf32, #tpu.memory_space<vmem>>, vector<1x2x32xf32>
    %336 = vector.shape_cast %335 : vector<1x2x32xf32> to vector<2x32xf32>
    %cst_130 = arith.constant dense<0.000000e+00> : vector<2x32xf32>
    %337 = tpu.matmul %307, %59, %cst_130 {dimension_numbers = #tpu.dot_dimension_numbers<[1], [0], [0], [1], [0, 0, 1, 1], [], []>} : vector<2x32xf32>, vector<32x32xf32>, vector<2x32xf32> -> vector<2x32xf32>
    %338 = arith.addf %336, %337 : vector<2x32xf32>
    %339 = arith.negf %338 : vector<2x32xf32>
    %340 = math.exp %339 : vector<2x32xf32>
    %cst_131 = arith.constant 1.000000e+00 : f32
    %341 = vector.broadcast %cst_131 : f32 to vector<2x32xf32>
    %342 = arith.addf %341, %340 : vector<2x32xf32>
    %343 = arith.divf %341, %342 : vector<2x32xf32>
    %344 = arith.mulf %327, %305 : vector<2x32xf32>
    %345 = arith.mulf %317, %333 : vector<2x32xf32>
    %346 = arith.addf %344, %345 : vector<2x32xf32>
    %347 = math.tanh %346 : vector<2x32xf32>
    %348 = arith.mulf %343, %347 : vector<2x32xf32>
    %c7_i32 = arith.constant 7 : i32
    %349 = arith.index_cast %c7_i32 : i32 to index
    %c0_132 = arith.constant 0 : index
    %c0_133 = arith.constant 0 : index
    %350 = vector.load %arg7[%349, %c0_132, %c0_133] : memref<8x2x32xf32, #tpu.memory_space<vmem>>, vector<1x2x32xf32>
    %351 = vector.shape_cast %350 : vector<1x2x32xf32> to vector<2x32xf32>
    %cst_134 = arith.constant dense<0.000000e+00> : vector<2x32xf32>
    %352 = tpu.matmul %348, %53, %cst_134 {dimension_numbers = #tpu.dot_dimension_numbers<[1], [0], [0], [1], [0, 0, 1, 1], [], []>} : vector<2x32xf32>, vector<32x32xf32>, vector<2x32xf32> -> vector<2x32xf32>
    %353 = arith.addf %351, %352 : vector<2x32xf32>
    %354 = arith.negf %353 : vector<2x32xf32>
    %355 = math.exp %354 : vector<2x32xf32>
    %cst_135 = arith.constant 1.000000e+00 : f32
    %356 = vector.broadcast %cst_135 : f32 to vector<2x32xf32>
    %357 = arith.addf %356, %355 : vector<2x32xf32>
    %358 = arith.divf %356, %357 : vector<2x32xf32>
    %359 = arith.index_cast %c7_i32 : i32 to index
    %c0_136 = arith.constant 0 : index
    %c0_137 = arith.constant 0 : index
    %360 = vector.load %arg8[%359, %c0_136, %c0_137] : memref<8x2x32xf32, #tpu.memory_space<vmem>>, vector<1x2x32xf32>
    %361 = vector.shape_cast %360 : vector<1x2x32xf32> to vector<2x32xf32>
    %cst_138 = arith.constant dense<0.000000e+00> : vector<2x32xf32>
    %362 = tpu.matmul %348, %55, %cst_138 {dimension_numbers = #tpu.dot_dimension_numbers<[1], [0], [0], [1], [0, 0, 1, 1], [], []>} : vector<2x32xf32>, vector<32x32xf32>, vector<2x32xf32> -> vector<2x32xf32>
    %363 = arith.addf %361, %362 : vector<2x32xf32>
    %364 = arith.negf %363 : vector<2x32xf32>
    %365 = math.exp %364 : vector<2x32xf32>
    %cst_139 = arith.constant 1.000000e+00 : f32
    %366 = vector.broadcast %cst_139 : f32 to vector<2x32xf32>
    %367 = arith.addf %366, %365 : vector<2x32xf32>
    %368 = arith.divf %366, %367 : vector<2x32xf32>
    %369 = arith.index_cast %c7_i32 : i32 to index
    %c0_140 = arith.constant 0 : index
    %c0_141 = arith.constant 0 : index
    %370 = vector.load %arg9[%369, %c0_140, %c0_141] : memref<8x2x32xf32, #tpu.memory_space<vmem>>, vector<1x2x32xf32>
    %371 = vector.shape_cast %370 : vector<1x2x32xf32> to vector<2x32xf32>
    %cst_142 = arith.constant dense<0.000000e+00> : vector<2x32xf32>
    %372 = tpu.matmul %348, %57, %cst_142 {dimension_numbers = #tpu.dot_dimension_numbers<[1], [0], [0], [1], [0, 0, 1, 1], [], []>} : vector<2x32xf32>, vector<32x32xf32>, vector<2x32xf32> -> vector<2x32xf32>
    %373 = arith.addf %371, %372 : vector<2x32xf32>
    %374 = math.tanh %373 : vector<2x32xf32>
    %375 = arith.index_cast %c7_i32 : i32 to index
    %c0_143 = arith.constant 0 : index
    %c0_144 = arith.constant 0 : index
    %376 = vector.load %arg10[%375, %c0_143, %c0_144] : memref<8x2x32xf32, #tpu.memory_space<vmem>>, vector<1x2x32xf32>
    %377 = vector.shape_cast %376 : vector<1x2x32xf32> to vector<2x32xf32>
    %cst_145 = arith.constant dense<0.000000e+00> : vector<2x32xf32>
    %378 = tpu.matmul %348, %59, %cst_145 {dimension_numbers = #tpu.dot_dimension_numbers<[1], [0], [0], [1], [0, 0, 1, 1], [], []>} : vector<2x32xf32>, vector<32x32xf32>, vector<2x32xf32> -> vector<2x32xf32>
    %379 = arith.addf %377, %378 : vector<2x32xf32>
    %380 = arith.negf %379 : vector<2x32xf32>
    %381 = math.exp %380 : vector<2x32xf32>
    %cst_146 = arith.constant 1.000000e+00 : f32
    %382 = vector.broadcast %cst_146 : f32 to vector<2x32xf32>
    %383 = arith.addf %382, %381 : vector<2x32xf32>
    %384 = arith.divf %382, %383 : vector<2x32xf32>
    %385 = arith.mulf %368, %346 : vector<2x32xf32>
    %386 = arith.mulf %358, %374 : vector<2x32xf32>
    %387 = arith.addf %385, %386 : vector<2x32xf32>
    %388 = math.tanh %387 : vector<2x32xf32>
    %389 = arith.mulf %384, %388 : vector<2x32xf32>
    %c8_i32 = arith.constant 8 : i32
    %c0_147 = arith.constant 0 : index
    %c0_148 = arith.constant 0 : index
    %390 = vector.load %arg4[%c0_147, %c0_148] : memref<1x32xf32, #tpu.memory_space<vmem>>, vector<1x32xf32>
    %391 = vector.broadcast %390 : vector<1x32xf32> to vector<2x32xf32>
    %392 = arith.mulf %389, %391 : vector<2x32xf32>
    %cst_149 = arith.constant dense<0.000000e+00> : vector<2xf32>
    %393 = vector.multi_reduction <add>, %392, %cst_149 [1] : vector<2x32xf32> to vector<2xf32>
    %394 = vector.shape_cast %393 : vector<2xf32> to vector<2x1xf32>
    %c0_150 = arith.constant 0 : index
    %c0_151 = arith.constant 0 : index
    %395 = vector.load %arg5[%c0_150, %c0_151] : memref<1x1xf32, #tpu.memory_space<vmem>>, vector<1x1xf32>
    %396 = vector.broadcast %395 : vector<1x1xf32> to vector<2x1xf32>
    %397 = arith.addf %394, %396 : vector<2x1xf32>
    %c0_152 = arith.constant 0 : index
    %c0_153 = arith.constant 0 : index
    %398 = vector.load %arg6[%c0_152, %c0_153] : memref<2x1xf32, #tpu.memory_space<vmem>>, vector<2x1xf32>
    tpu.vector_store %arg6[%c0_152, %c0_153], %397 {strides = array<i32>} : memref<2x1xf32, #tpu.memory_space<vmem>>, vector<2x1xf32>,
    return
  }
}

</mosaic_0001>

<bundles_post_ra>
// kernel: tpu_custom_call.1
= control target key start
LH: loop header
LB: loop body
LE: loop exit
PB: predicated region body
PF: predicated region fallthrough
CT: control target
= control target key end

     0   :  { %s4222_s0 = inlined_call_operand.vmem [shape: f32[8,2], index: 0, kind: input, shape index: {}]   ;;  %s4223_s1 = inlined_call_operand.vmem [shape: f32[4,32], index: 1, kind: input, shape index: {}]   ;;  %s4224_s2 = inlined_call_operand.hbm [shape: f32[4,32,32], index: 2, kind: input, shape index: {}]   ;;  %s4225_s3 = inlined_call_operand.vmem [shape: f32[4,32], index: 3, kind: input, shape index: {}]   ;;  %s4226_s4 = inlined_call_operand.vmem [shape: f32[1,32], index: 4, kind: input, shape index: {}]   ;;  %s4227_s5 = inlined_call_operand.<no memory space> [shape: f32[1,1], index: 5, kind: input, shape index: {}]   ;;  %s4228_s6 = inlined_call_operand.vmem [shape: f32[2,1], index: 6, kind: output, shape index: {}]  }
   0x1   :  { %v11_v0 = vstv %s4227_s5 }
   0x2   :  { %12 = vst [vmem:[#allocation6] sm:$0x1] %v11_v0 }
   0x3   :  { %13 = vsyncpa [#allocation8], 0  ;;  %s3738_s23 = smov [#allocation7]   ;;  %s3714_s27 = scalar_lea.hbm %s4224_s2, 2048 }
   0x4   :  { %s23_s24 = sshll.u32 %s3738_s23, 4  ;;  %p3715_p0 = scmp.ne.s32.totalorder %s4224_s2, %s3714_s27  ;;  %s24_s24 = int_to_ptr.vmem [resolvable:$true] %s23_s24 }
   0x5   :  { %p3718_p1 = scmp.lt.u32.totalorder %s3714_s27, %s4224_s2 }
   0x7   :  { %p3720_p2 = pnand %p3718_p1, %p3715_p0 }
   0x9   :  { %3723 = shalt.err (!%p3720_p2)
}
   0xa   :  { %s3724_s5 = scalar_lea.vmem %s24_s24, 2048  ;;  %p3729_p4 = scmp.lt.s32.totalorder %s24_s24, %s24_s24 }
   0xb   :  { %p3725_p3 = scmp.ne.s32.totalorder %s24_s24, %s3724_s5  ;;  %p3730_p5 = scmp.lt.s32.totalorder %s3724_s5, %s3724_s5 }
   0xd   :  { %p3731_p6 = por %p3730_p5, %p3729_p4 }
   0xf   :  { %p3732_p7 = pnand %p3731_p6, %p3725_p3 }
  0x11   :  { %3735 = shalt.err (!%p3732_p7)
}
  0x12   :  { %s3739_s8 = smov 128   ;;  %s3740_s9 = smov 8  }
  0x13   :  { %29 = dma.hbm_to_vmem [thread:$0]  %s4224_s2, 2048, %s24_s24, [#allocation8], %s3739_s8, %s3739_s8, %s3740_s9  }
  0x14   :  { %3736 = dma.done.wait [#allocation8], 2048  }
  0x15   :  { %3737 = vsyncadd [#allocation8], 4294965248  ;;  %v3741_v1 = vmov 0.0|0.0   ;;  %v40_v2 = vlaneseq  ;;  %vm3742_vm0 = vmmov 0   ;;  %v3743_v3 = vmov 0.0   ;;  %v227_v5 = vld [vmem:[#allocation7] sm:$0xff] }
  0x16   :  { %3387 = vmatprep.subr.bf16.mxu0 %v3741_v1  ;;  %3393 = vmatprep.subr.bf16.mxu1 %v3741_v1  ;;  %v228_v6 = vld [vmem:[#allocation7 + $0x8] sm:$0xff]  ;;  %v232_v7 = vld [vmem:[#allocation7 + $0x20] sm:$0xff]  ;;  %v229_v10 = vld [vmem:[#allocation7 + $0x10] sm:$0xff]  ;;  %vm122_vm1 = vcmask 254976   ;;  %vm247_vm2 = vcmask 261120   ;;  %vm2814_vm3 = vcmask 1024  }
  0x17   :  { %3043 = vmatprep.mubr.msk.f32.mxu0 %vm3742_vm0, %v3743_v3  ;;  %3054 = vmatprep.mubr.msk.f32.mxu1 %vm3742_vm0, %v3743_v3  ;;  %v3800_v4 = vshrl.u32 %v40_v2, 7  ;;  %v3802_v8 = vpack.c.bf16 %v228_v6, %v227_v5  ;;  %v233_v9 = vld [vmem:[#allocation7 + $0x28] sm:$0xff]  ;;  %v230_v11 = vld [vmem:[#allocation7 + $0x18] sm:$0xff]  ;;  %v234_v13 = vld [vmem:[#allocation7 + $0x30] sm:$0xff] }
  0x18   :  { %v3804_v12 = vpack.c.bf16 %v233_v9, %v232_v7  ;;  %v235_v14 = vld [vmem:[#allocation7 + $0x38] sm:$0xff]  ;;  %v3808_v16 = vpack.c.bf16 %v230_v11, %v229_v10  ;;  %v237_v18 = vld [vmem:[#allocation7 + $0x40] sm:$0xff]  ;;  %v238_v19 = vld [vmem:[#allocation7 + $0x48] sm:$0xff] }
  0x19   :  { %v42_v15 = vsub.s32 0, %v3800_v4  ;;  %3389 = vmatpush3.bf16.msra.mxu0 %v3802_v8  ;;  %v3812_v17 = vpack.c.bf16 %v235_v14, %v234_v13  ;;  %v242_v20 = vld [vmem:[#allocation7 + $0x60] sm:$0xff]  ;;  %v243_v21 = vld [vmem:[#allocation7 + $0x68] sm:$0xff]  ;;  %v3822_v24 = vpack.c.bf16 %v238_v19, %v237_v18  ;;  %v239_v26 = vld [vmem:[#allocation7 + $0x50] sm:$0xff]  ;;  %v49_v32 = vsub.s32 1, %v3800_v4 }
  0x1a   :  { %3395 = vmatpush3.bf16.msra.mxu1 %v3804_v12  ;;  %3390 = vmatprep.subr.bf16.mxu0 %v3741_v1  ;;  %v3818_v22 = vld [vmem:[%s4222_s0] sm:$0xff]  ;;  %v3826_v25 = vpack.c.bf16 %v243_v21, %v242_v20  ;;  %v244_v28 = vld [vmem:[#allocation7 + $0x70] sm:$0xff]  ;;  %v3863_v33 = vsub.s32 2, %v3800_v4  ;;  %v3866_v34 = vsub.s32 3, %v3800_v4 }
  0x1b   :  { %3396 = vmatprep.subr.bf16.mxu1 %v3741_v1  ;;  %v43_v23 = vrot.slane %v3818_v22, %v42_v15  ;;  %v240_v27 = vld [vmem:[#allocation7 + $0x58] sm:$0xff]  ;;  %v50_v54 = vrot.slane %v3818_v22, %v49_v32 }
  0x1c   :  { %v245_v29 = vld [vmem:[#allocation7 + $0x78] sm:$0xff]  ;;  %v3832_v30 = vpack.c.bf16 %v240_v27, %v239_v26 }
  0x1d   :  { %3392 = vmatpush3.bf16.msra.mxu0 %v3808_v16  ;;  %45 = vbcast.lane.b32.xlu0 %v43_v23, 256  ;;  %v3836_v31 = vpack.c.bf16 %v245_v29, %v244_v28  ;;  %v96_v35 = vld [vmem:[%s4223_s1] sm:$0xf] }
  0x1e   :  { %3398 = vmatpush3.bf16.msra.mxu1 %v3812_v17  ;;  %3399 = vmatprep.subr.bf16.mxu0 %v3741_v1  ;;  %v97_v36 = vld [vmem:[%s4225_s3] sm:$0xf]  ;;  %v3874_v37 = vrot.slane %v96_v35, %v42_v15  ;;  %v3876_v38 = vrot.slane %v96_v35, %v49_v32  ;;  %v3879_v39 = vrot.slane %v96_v35, %v3863_v33 }
  0x1f   :  { %3405 = vmatprep.subr.bf16.mxu1 %v3741_v1  ;;  %v3882_v40 = vrot.slane %v96_v35, %v3866_v34  ;;  %v3884_v41 = vrot.slane %v97_v36, %v42_v15  ;;  %v3886_v42 = vrot.slane %v97_v36, %v49_v32  ;;  %v3889_v43 = vrot.slane %v97_v36, %v3863_v33 }
  0x20   :  { %3044 = vmatmul.mubr.f32.vlgmr.msra.gmra.mrb[0].mxu0 %v3743_v3  ;;  %v3892_v44 = vrot.slane %v97_v36, %v3866_v34 }
  0x21   :  { %3055 = vmatmul.mubr.f32.vlgmr.msra.gmra.mrb[0].mxu1 %v3743_v3  ;;  %3401 = vmatpush3.bf16.msra.mxu0 %v3822_v24 }
  0x22   :  { %3407 = vmatpush3.bf16.msra.mxu1 %v3826_v25  ;;  %3402 = vmatprep.subr.bf16.mxu0 %v3741_v1 }
  0x23   :  { %3408 = vmatprep.subr.bf16.mxu1 %v3741_v1  ;;  %3065 = vmatprep.mubr.msk.f32.mxu0 %vm3742_vm0, %v3743_v3 }
  0x24   :  { %3076 = vmatprep.mubr.msk.f32.mxu1 %vm3742_vm0, %v3743_v3  ;;  %52 = vbcast.lane.b32.xlu0 %v50_v54, 256 }
  0x25   :  { %3404 = vmatpush3.bf16.msra.mxu0 %v3832_v30 }
  0x26   :  { %3410 = vmatpush3.bf16.msra.mxu1 %v3836_v31  ;;  %3411 = vmatprep.subr.bf16.mxu0 %v3741_v1 }
  0x27   :  { %3417 = vmatprep.subr.bf16.mxu1 %v3741_v1 }
  0x28   :  { %3066 = vmatmul.mubr.f32.vlgmr.msra.gmra.mrb[2].mxu0 %v3743_v3 }
  0x29   :  { %3077 = vmatmul.mubr.f32.vlgmr.msra.gmra.mrb[2].mxu1 %v3743_v3  ;;  %3413 = vmatpush3.bf16.msra.mxu0 %v3802_v8 }
  0x2a   :  { %3419 = vmatpush3.bf16.msra.mxu1 %v3804_v12  ;;  %3414 = vmatprep.subr.bf16.mxu0 %v3741_v1 }
  0x2b   :  { %3420 = vmatprep.subr.bf16.mxu1 %v3741_v1  ;;  %3087 = vmatprep.mubr.msk.f32.mxu0 %vm3742_vm0, %v3743_v3 }
  0x2c   :  { %3098 = vmatprep.mubr.msk.f32.mxu1 %vm3742_vm0, %v3743_v3 }
  0x2d   :  { %3416 = vmatpush3.bf16.msra.mxu0 %v3808_v16 }
  0x2e   :  { %3422 = vmatpush3.bf16.msra.mxu1 %v3812_v17  ;;  %3423 = vmatprep.subr.bf16.mxu0 %v3741_v1 }
  0x2f   :  { %3429 = vmatprep.subr.bf16.mxu1 %v3741_v1 }
  0x8f   :  { %v46_v45 = vpop.permute.xlu0 %45 }
  0x90   :  { %v102_v46 = vmul.f32 %v3874_v37, %v46_v45  ;;  %v135_v47 = vmul.f32 %v3876_v38, %v46_v45  ;;  %v167_v48 = vmul.f32 %v3879_v39, %v46_v45  ;;  %v199_v49 = vmul.f32 %v3882_v40, %v46_v45 }
  0x92   :  { %v114_v50 = vadd.f32 %v3884_v41, %v102_v46  ;;  %v147_v51 = vadd.f32 %v3886_v42, %v135_v47  ;;  %v179_v52 = vadd.f32 %v3889_v43, %v167_v48  ;;  %v211_v53 = vadd.f32 %v3892_v44, %v199_v49 }
  0x94   :  { %123 = vst.msk [vmem:[#allocation2] sm:$0x3] %vm122_vm1, %v114_v50  ;;  %155 = vst.msk [vmem:[#allocation3] sm:$0x3] %vm122_vm1, %v147_v51 }
  0x95   :  { %187 = vst.msk [vmem:[#allocation4] sm:$0x3] %vm122_vm1, %v179_v52  ;;  %219 = vst.msk [vmem:[#allocation5] sm:$0x3] %vm122_vm1, %v211_v53 }
  0x96   :  { %v53_v45 = vpop.permute.xlu0 %52 }
  0x97   :  { %v103_v47 = vmul.f32 %v3874_v37, %v53_v45  ;;  %v136_v48 = vmul.f32 %v3876_v38, %v53_v45  ;;  %v168_v49 = vmul.f32 %v3879_v39, %v53_v45  ;;  %v200_v50 = vmul.f32 %v3882_v40, %v53_v45 }
  0x99   :  { %v115_v52 = vadd.f32 %v3884_v41, %v103_v47  ;;  %v148_v53 = vadd.f32 %v3886_v42, %v136_v48  ;;  %v180_v54 = vadd.f32 %v3889_v43, %v168_v49 }
  0x9b   :  { %v246_v55 = vld [vmem:[#allocation2] sm:$0x3]  ;;  %v328_v56 = vld [vmem:[#allocation3] sm:$0x3]  ;;  %124 = vst.msk [vmem:[#allocation2 + $0x2] sm:$0x3] %vm122_vm1, %v115_v52 }
  0x9c   :  { %v479_v5 = vld [vmem:[#allocation5] sm:$0x3]  ;;  %v406_v11 = vld [vmem:[#allocation4] sm:$0x3]  ;;  %156 = vst.msk [vmem:[#allocation3 + $0x2] sm:$0x3] %vm122_vm1, %v148_v53 }
  0x9d   :  { %188 = vst.msk [vmem:[#allocation4 + $0x2] sm:$0x3] %vm122_vm1, %v180_v54 }
  0xf3   :  { %v317_v57 = vpop.f32.mrb[0].mxu0 }
  0xf4   :  { %v321_v58 = vadd.f32 %v317_v57, %v246_v55  ;;  %v395_v59 = vpop.f32.mrb[0].mxu1  ;;  %v3045_v60 = vpop.f32.mrb[1].mxu0  ;;  %v212_v55 = vadd.f32 %v3892_v44, %v200_v50  ;;  %v563_v57 = vld [vmem:[#allocation2 + $0x2] sm:$0x3] }
  0xf5   :  { %v399_v61 = vadd.f32 %v395_v59, %v328_v56  ;;  %v3056_v62 = vpop.f32.mrb[1].mxu1  ;;  %v57_v56 = vrot.slane %v3818_v22, %v3863_v33  ;;  %v724_v33 = vld [vmem:[#allocation4 + $0x2] sm:$0x3] }
  0xf6   :  { %v2821_v63 = vmul.f32 -1.442695, %v321_v58  ;;  %220 = vst.msk [vmem:[#allocation5 + $0x2] sm:$0x3] %vm122_vm1, %v212_v55  ;;  %v645_v58 = vld [vmem:[#allocation3 + $0x2] sm:$0x3] }
  0xf7   :  { %v2822_v0 = vmul.f32 -1.442695, %v399_v61  ;;  %59 = vbcast.lane.b32.xlu1 %v57_v56, 256 }
  0xf8   :  { %3585 = vpow2.f32 %v2821_v63 }
  0xf9   :  { %3587 = vpow2.f32 %v2822_v0 }
  0xfb   :  { %v473_v2 = vpop.f32.mrb[2].mxu0 }
  0xfc   :  { %v546_v6 = vpop.f32.mrb[2].mxu1  ;;  %v3067_v7 = vpop.f32.mrb[3].mxu0  ;;  %v477_v14 = vadd.f32 %v473_v2, %v406_v11 }
  0xfd   :  { %v550_v9 = vadd.f32 %v546_v6, %v479_v5  ;;  %v3078_v10 = vpop.f32.mrb[3].mxu1  ;;  %v798_v7 = vld [vmem:[#allocation5 + $0x2] sm:$0x3] }
  0xff   :  { %v2823_v13 = vmul.f32 -1.442695, %v550_v9 }
 0x101   :  { %3589 = vpow2.f32 %v2823_v13 }
 0x102   :  { %v3586_v15 = vpop.eup %3585  ;;  %3591 = vtanh.f32 %v477_v14 }
 0x103   :  { %v3588_v18 = vpop.eup %3587  ;;  %v325_v19 = vadd.f32 1.0, %v3586_v15 }
 0x104   :  { %v403_v20 = vadd.f32 1.0, %v3588_v18 }
 0x105   :  { %3593 = vrcp.f32 %v325_v19 }
 0x106   :  { %3595 = vrcp.f32 %v403_v20 }
 0x10b   :  { %v3590_v21 = vpop.eup %3589 }
 0x10c   :  { %v3592_v23 = vpop.eup %3591  ;;  %v554_v29 = vadd.f32 1.0, %v3590_v21 }
 0x10e   :  { %3597 = vrcp.f32 %v554_v29 }
 0x10f   :  { %v3594_v26 = vpop.eup %3593 }
 0x110   :  { %v3596_v27 = vpop.eup %3595  ;;  %v558_v28 = vmul.f32 %v3594_v26, %v3592_v23 }
 0x111   :  { %v557_v32 = vmul.f32 0.0, %v3596_v27 }
 0x113   :  { %v3907_v35 = vadd.f32 %v558_v28, %v557_v32 }
 0x115   :  { %3599 = vtanh.f32 %v3907_v35 }
 0x118   :  { %v3598_v36 = vpop.eup %3597 }
 0x11f   :  { %v3600_v46 = vpop.eup %3599 }
 0x120   :  { %v561_v51 = vmul.f32 %v3600_v46, %v3598_v36 }
 0x122   :  { %3088 = vmatmul.mubr.msk.f32.vlgmr.msra.gmra.mrb[4].mxu0 %vm247_vm2, %v561_v51  ;;  %3099 = vmatmul.mubr.msk.f32.vlgmr.msra.gmra.mrb[4].mxu1 %vm247_vm2, %v561_v51 }
 0x123   :  { %3425 = vmatpush3.bf16.msra.mxu0 %v3822_v24  ;;  %3431 = vmatpush3.bf16.msra.mxu1 %v3826_v25 }
 0x124   :  { %3426 = vmatprep.subr.bf16.mxu0 %v3741_v1  ;;  %3432 = vmatprep.subr.bf16.mxu1 %v3741_v1 }
 0x125   :  { %3109 = vmatprep.mubr.msk.f32.mxu0 %vm3742_vm0, %v3743_v3  ;;  %3120 = vmatprep.mubr.msk.f32.mxu1 %vm3742_vm0, %v3743_v3 }
 0x127   :  { %3428 = vmatpush3.bf16.msra.mxu0 %v3832_v30  ;;  %3434 = vmatpush3.bf16.msra.mxu1 %v3836_v31 }
 0x128   :  { %3435 = vmatprep.subr.bf16.mxu0 %v3741_v1  ;;  %3441 = vmatprep.subr.bf16.mxu1 %v3741_v1 }
 0x12a   :  { %3110 = vmatmul.mubr.msk.f32.vlgmr.msra.gmra.mrb[6].mxu0 %vm247_vm2, %v561_v51  ;;  %3121 = vmatmul.mubr.msk.f32.vlgmr.msra.gmra.mrb[6].mxu1 %vm247_vm2, %v561_v51 }
 0x12b   :  { %3437 = vmatpush3.bf16.msra.mxu0 %v3802_v8  ;;  %3443 = vmatpush3.bf16.msra.mxu1 %v3804_v12 }
 0x12c   :  { %3438 = vmatprep.subr.bf16.mxu0 %v3741_v1  ;;  %3444 = vmatprep.subr.bf16.mxu1 %v3741_v1 }
 0x12d   :  { %3131 = vmatprep.mubr.msk.f32.mxu0 %vm3742_vm0, %v3743_v3  ;;  %3142 = vmatprep.mubr.msk.f32.mxu1 %vm3742_vm0, %v3743_v3 }
 0x12f   :  { %3440 = vmatpush3.bf16.msra.mxu0 %v3808_v16  ;;  %3446 = vmatpush3.bf16.msra.mxu1 %v3812_v17 }
 0x130   :  { %3447 = vmatprep.subr.bf16.mxu0 %v3741_v1  ;;  %3453 = vmatprep.subr.bf16.mxu1 %v3741_v1 }
 0x169   :  { %v60_v47 = vpop.permute.xlu1 %59 }
 0x16a   :  { %v104_v49 = vmul.f32 %v3874_v37, %v60_v47  ;;  %v137_v50 = vmul.f32 %v3876_v38, %v60_v47  ;;  %v169_v51 = vmul.f32 %v3879_v39, %v60_v47  ;;  %v201_v52 = vmul.f32 %v3882_v40, %v60_v47 }
 0x16c   :  { %v116_v54 = vadd.f32 %v3884_v41, %v104_v49  ;;  %v181_v55 = vadd.f32 %v3889_v43, %v169_v51  ;;  %v213_v56 = vadd.f32 %v3892_v44, %v201_v52 }
 0x16e   :  { %125 = vst.msk [vmem:[#allocation2 + $0x4] sm:$0x3] %vm122_vm1, %v116_v54  ;;  %189 = vst.msk [vmem:[#allocation4 + $0x4] sm:$0x3] %vm122_vm1, %v181_v55 }
 0x16f   :  { %221 = vst.msk [vmem:[#allocation5 + $0x4] sm:$0x3] %vm122_vm1, %v213_v56 }
 0x1f5   :  { %v633_v59 = vpop.f32.mrb[4].mxu0  ;;  %v712_v60 = vpop.f32.mrb[4].mxu1 }
 0x1f6   :  { %v637_v61 = vadd.f32 %v633_v59, %v563_v57  ;;  %v716_v62 = vadd.f32 %v712_v60, %v645_v58  ;;  %v3089_v63 = vpop.f32.mrb[5].mxu0  ;;  %v3100_v0 = vpop.f32.mrb[5].mxu1  ;;  %v64_v57 = vrot.slane %v3818_v22, %v3866_v34  ;;  %v882_v58 = vld [vmem:[#allocation2 + $0x4] sm:$0x3] }
 0x1f7   :  { %v1043_v34 = vld [vmem:[#allocation4 + $0x4] sm:$0x3] }
 0x1f8   :  { %v2825_v2 = vmul.f32 -1.442695, %v637_v61  ;;  %v2827_v5 = vmul.f32 -1.442695, %v716_v62  ;;  %66 = vbcast.lane.b32.xlu1 %v64_v57, 256  ;;  %v70_v57 = vsub.s32 4, %v3800_v4 }
 0x1fa   :  { %3601 = vpow2.f32 %v2825_v2 }
 0x1fb   :  { %3603 = vpow2.f32 %v2827_v5 }
 0x1fd   :  { %v791_v6 = vpop.f32.mrb[6].mxu0  ;;  %v865_v9 = vpop.f32.mrb[6].mxu1 }
 0x1fe   :  { %v869_v10 = vadd.f32 %v865_v9, %v798_v7  ;;  %v3111_v11 = vpop.f32.mrb[7].mxu0  ;;  %v3122_v13 = vpop.f32.mrb[7].mxu1  ;;  %v795_v15 = vadd.f32 %v791_v6, %v724_v33  ;;  %v1117_v9 = vld [vmem:[#allocation5 + $0x4] sm:$0x3] }
 0x200   :  { %v2830_v14 = vmul.f32 -1.442695, %v869_v10 }
 0x202   :  { %3605 = vpow2.f32 %v2830_v14 }
 0x203   :  { %3607 = vtanh.f32 %v795_v15 }
 0x204   :  { %v3602_v18 = vpop.eup %3601 }
 0x205   :  { %v3604_v19 = vpop.eup %3603  ;;  %v641_v20 = vadd.f32 1.0, %v3602_v18 }
 0x206   :  { %v720_v21 = vadd.f32 1.0, %v3604_v19 }
 0x207   :  { %3609 = vrcp.f32 %v641_v20 }
 0x208   :  { %3611 = vrcp.f32 %v720_v21 }
 0x20c   :  { %v3606_v23 = vpop.eup %3605 }
 0x20d   :  { %v3608_v26 = vpop.eup %3607  ;;  %v873_v32 = vadd.f32 1.0, %v3606_v23 }
 0x20f   :  { %3613 = vrcp.f32 %v873_v32 }
 0x211   :  { %v3610_v27 = vpop.eup %3609 }
 0x212   :  { %v3612_v28 = vpop.eup %3611  ;;  %v877_v29 = vmul.f32 %v3610_v27, %v3608_v26 }
 0x213   :  { %v876_v36 = vmul.f32 %v3612_v28, %v3907_v35  ;;  %v149_v35 = vadd.f32 %v3886_v42, %v137_v50 }
 0x215   :  { %v3953_v45 = vadd.f32 %v877_v29, %v876_v36  ;;  %157 = vst.msk [vmem:[#allocation3 + $0x4] sm:$0x3] %vm122_vm1, %v149_v35 }
 0x217   :  { %3615 = vtanh.f32 %v3953_v45 }
 0x219   :  { %v3614_v46 = vpop.eup %3613 }
 0x21c   :  { %v964_v59 = vld [vmem:[#allocation3 + $0x4] sm:$0x3] }
 0x221   :  { %v3616_v48 = vpop.eup %3615 }
 0x222   :  { %v880_v53 = vmul.f32 %v3616_v48, %v3614_v46 }
 0x224   :  { %3132 = vmatmul.mubr.msk.f32.vlgmr.msra.gmra.mrb[8].mxu0 %vm247_vm2, %v880_v53  ;;  %3143 = vmatmul.mubr.msk.f32.vlgmr.msra.gmra.mrb[8].mxu1 %vm247_vm2, %v880_v53 }
 0x225   :  { %3449 = vmatpush3.bf16.msra.mxu0 %v3822_v24  ;;  %3455 = vmatpush3.bf16.msra.mxu1 %v3826_v25 }
 0x226   :  { %3450 = vmatprep.subr.bf16.mxu0 %v3741_v1  ;;  %3456 = vmatprep.subr.bf16.mxu1 %v3741_v1 }
 0x227   :  { %3153 = vmatprep.mubr.msk.f32.mxu0 %vm3742_vm0, %v3743_v3  ;;  %3164 = vmatprep.mubr.msk.f32.mxu1 %vm3742_vm0, %v3743_v3 }
 0x229   :  { %3452 = vmatpush3.bf16.msra.mxu0 %v3832_v30  ;;  %3458 = vmatpush3.bf16.msra.mxu1 %v3836_v31 }
 0x22a   :  { %3459 = vmatprep.subr.bf16.mxu0 %v3741_v1  ;;  %3465 = vmatprep.subr.bf16.mxu1 %v3741_v1 }
 0x22c   :  { %3154 = vmatmul.mubr.msk.f32.vlgmr.msra.gmra.mrb[10].mxu0 %vm247_vm2, %v880_v53  ;;  %3165 = vmatmul.mubr.msk.f32.vlgmr.msra.gmra.mrb[10].mxu1 %vm247_vm2, %v880_v53 }
 0x22d   :  { %3461 = vmatpush3.bf16.msra.mxu0 %v3802_v8  ;;  %3467 = vmatpush3.bf16.msra.mxu1 %v3804_v12 }
 0x22e   :  { %3462 = vmatprep.subr.bf16.mxu0 %v3741_v1  ;;  %3468 = vmatprep.subr.bf16.mxu1 %v3741_v1 }
 0x22f   :  { %3175 = vmatprep.mubr.msk.f32.mxu0 %vm3742_vm0, %v3743_v3  ;;  %3186 = vmatprep.mubr.msk.f32.mxu1 %vm3742_vm0, %v3743_v3 }
 0x231   :  { %3464 = vmatpush3.bf16.msra.mxu0 %v3808_v16  ;;  %3470 = vmatpush3.bf16.msra.mxu1 %v3812_v17 }
 0x232   :  { %3471 = vmatprep.subr.bf16.mxu0 %v3741_v1  ;;  %3477 = vmatprep.subr.bf16.mxu1 %v3741_v1 }
 0x26a   :  { %v67_v48 = vpop.permute.xlu1 %66 }
 0x26b   :  { %v105_v50 = vmul.f32 %v3874_v37, %v67_v48  ;;  %v138_v51 = vmul.f32 %v3876_v38, %v67_v48  ;;  %v170_v52 = vmul.f32 %v3879_v39, %v67_v48  ;;  %v202_v53 = vmul.f32 %v3882_v40, %v67_v48 }
 0x26d   :  { %v117_v35 = vadd.f32 %v3884_v41, %v105_v50  ;;  %v182_v55 = vadd.f32 %v3889_v43, %v170_v52  ;;  %v214_v56 = vadd.f32 %v3892_v44, %v202_v53 }
 0x26f   :  { %126 = vst.msk [vmem:[#allocation2 + $0x6] sm:$0x3] %vm122_vm1, %v117_v35  ;;  %190 = vst.msk [vmem:[#allocation4 + $0x6] sm:$0x3] %vm122_vm1, %v182_v55 }
 0x270   :  { %222 = vst.msk [vmem:[#allocation5 + $0x6] sm:$0x3] %vm122_vm1, %v214_v56 }
 0x2f7   :  { %v952_v60 = vpop.f32.mrb[8].mxu0  ;;  %v1031_v61 = vpop.f32.mrb[8].mxu1 }
 0x2f8   :  { %v956_v62 = vadd.f32 %v952_v60, %v882_v58  ;;  %v1035_v63 = vadd.f32 %v1031_v61, %v964_v59  ;;  %v3133_v0 = vpop.f32.mrb[9].mxu0  ;;  %v3144_v2 = vpop.f32.mrb[9].mxu1  ;;  %v71_v58 = vrot.slane %v3818_v22, %v70_v57  ;;  %v1201_v59 = vld [vmem:[#allocation2 + $0x6] sm:$0x3] }
 0x2fa   :  { %v2832_v5 = vmul.f32 -1.442695, %v956_v62  ;;  %v2834_v6 = vmul.f32 -1.442695, %v1035_v63  ;;  %73 = vbcast.lane.b32.xlu0 %v71_v58, 256  ;;  %v77_v58 = vsub.s32 5, %v3800_v4 }
 0x2fc   :  { %3617 = vpow2.f32 %v2832_v5 }
 0x2fd   :  { %3619 = vpow2.f32 %v2834_v6 }
 0x2ff   :  { %v1110_v7 = vpop.f32.mrb[10].mxu0  ;;  %v1184_v10 = vpop.f32.mrb[10].mxu1 }
 0x300   :  { %v1188_v11 = vadd.f32 %v1184_v10, %v1117_v9  ;;  %v3155_v13 = vpop.f32.mrb[11].mxu0  ;;  %v3166_v33 = vpop.f32.mrb[11].mxu1  ;;  %v1114_v15 = vadd.f32 %v1110_v7, %v1043_v34  ;;  %v1436_v10 = vld [vmem:[#allocation5 + $0x6] sm:$0x3] }
 0x302   :  { %v2837_v14 = vmul.f32 -1.442695, %v1188_v11 }
 0x304   :  { %3621 = vpow2.f32 %v2837_v14  ;;  %v1362_v14 = vld [vmem:[#allocation4 + $0x6] sm:$0x3] }
 0x305   :  { %3623 = vtanh.f32 %v1114_v15 }
 0x306   :  { %v3618_v18 = vpop.eup %3617 }
 0x307   :  { %v3620_v19 = vpop.eup %3619  ;;  %v960_v20 = vadd.f32 1.0, %v3618_v18 }
 0x308   :  { %v1039_v21 = vadd.f32 1.0, %v3620_v19 }
 0x309   :  { %3625 = vrcp.f32 %v960_v20 }
 0x30a   :  { %3627 = vrcp.f32 %v1039_v21 }
 0x30e   :  { %v3622_v23 = vpop.eup %3621 }
 0x30f   :  { %v3624_v26 = vpop.eup %3623  ;;  %v1192_v32 = vadd.f32 1.0, %v3622_v23 }
 0x311   :  { %3629 = vrcp.f32 %v1192_v32 }
 0x313   :  { %v3626_v27 = vpop.eup %3625 }
 0x314   :  { %v3628_v28 = vpop.eup %3627  ;;  %v1196_v29 = vmul.f32 %v3626_v27, %v3624_v26 }
 0x315   :  { %v1195_v36 = vmul.f32 %v3628_v28, %v3953_v45  ;;  %v150_v45 = vadd.f32 %v3886_v42, %v138_v51 }
 0x317   :  { %v3999_v46 = vadd.f32 %v1196_v29, %v1195_v36  ;;  %158 = vst.msk [vmem:[#allocation3 + $0x6] sm:$0x3] %vm122_vm1, %v150_v45 }
 0x319   :  { %3631 = vtanh.f32 %v3999_v46 }
 0x31b   :  { %v3630_v47 = vpop.eup %3629 }
 0x31e   :  { %v1283_v60 = vld [vmem:[#allocation3 + $0x6] sm:$0x3] }
 0x323   :  { %v3632_v49 = vpop.eup %3631 }
 0x324   :  { %v1199_v54 = vmul.f32 %v3632_v49, %v3630_v47 }
 0x326   :  { %3176 = vmatmul.mubr.msk.f32.vlgmr.msra.gmra.mrb[12].mxu0 %vm247_vm2, %v1199_v54  ;;  %3187 = vmatmul.mubr.msk.f32.vlgmr.msra.gmra.mrb[12].mxu1 %vm247_vm2, %v1199_v54 }
 0x327   :  { %3473 = vmatpush3.bf16.msra.mxu0 %v3822_v24  ;;  %3479 = vmatpush3.bf16.msra.mxu1 %v3826_v25 }
 0x328   :  { %3474 = vmatprep.subr.bf16.mxu0 %v3741_v1  ;;  %3480 = vmatprep.subr.bf16.mxu1 %v3741_v1 }
 0x329   :  { %3197 = vmatprep.mubr.msk.f32.mxu0 %vm3742_vm0, %v3743_v3  ;;  %3208 = vmatprep.mubr.msk.f32.mxu1 %vm3742_vm0, %v3743_v3 }
 0x32b   :  { %3476 = vmatpush3.bf16.msra.mxu0 %v3832_v30  ;;  %3482 = vmatpush3.bf16.msra.mxu1 %v3836_v31 }
 0x32c   :  { %3483 = vmatprep.subr.bf16.mxu0 %v3741_v1  ;;  %3489 = vmatprep.subr.bf16.mxu1 %v3741_v1 }
 0x32e   :  { %3198 = vmatmul.mubr.msk.f32.vlgmr.msra.gmra.mrb[14].mxu0 %vm247_vm2, %v1199_v54  ;;  %3209 = vmatmul.mubr.msk.f32.vlgmr.msra.gmra.mrb[14].mxu1 %vm247_vm2, %v1199_v54 }
 0x32f   :  { %3485 = vmatpush3.bf16.msra.mxu0 %v3802_v8  ;;  %3491 = vmatpush3.bf16.msra.mxu1 %v3804_v12 }
 0x330   :  { %3486 = vmatprep.subr.bf16.mxu0 %v3741_v1  ;;  %3492 = vmatprep.subr.bf16.mxu1 %v3741_v1 }
 0x331   :  { %3219 = vmatprep.mubr.msk.f32.mxu0 %vm3742_vm0, %v3743_v3  ;;  %3230 = vmatprep.mubr.msk.f32.mxu1 %vm3742_vm0, %v3743_v3 }
 0x333   :  { %3488 = vmatpush3.bf16.msra.mxu0 %v3808_v16  ;;  %3494 = vmatpush3.bf16.msra.mxu1 %v3812_v17 }
 0x334   :  { %3495 = vmatprep.subr.bf16.mxu0 %v3741_v1  ;;  %3501 = vmatprep.subr.bf16.mxu1 %v3741_v1 }
 0x36c   :  { %v74_v52 = vpop.permute.xlu0 %73 }
 0x36d   :  { %v106_v53 = vmul.f32 %v3874_v37, %v74_v52  ;;  %v139_v54 = vmul.f32 %v3876_v38, %v74_v52  ;;  %v171_v35 = vmul.f32 %v3879_v39, %v74_v52  ;;  %v203_v45 = vmul.f32 %v3882_v40, %v74_v52 }
 0x36f   :  { %v151_v55 = vadd.f32 %v3886_v42, %v139_v54  ;;  %v183_v56 = vadd.f32 %v3889_v43, %v171_v35  ;;  %v215_v57 = vadd.f32 %v3892_v44, %v203_v45 }
 0x371   :  { %159 = vst.msk [vmem:[#allocation3 + $0x8] sm:$0x3] %vm122_vm1, %v151_v55  ;;  %191 = vst.msk [vmem:[#allocation4 + $0x8] sm:$0x3] %vm122_vm1, %v183_v56 }
 0x372   :  { %223 = vst.msk [vmem:[#allocation5 + $0x8] sm:$0x3] %vm122_vm1, %v215_v57 }
 0x3f9   :  { %v1271_v61 = vpop.f32.mrb[12].mxu0  ;;  %v1350_v62 = vpop.f32.mrb[12].mxu1 }
 0x3fa   :  { %v1275_v63 = vadd.f32 %v1271_v61, %v1201_v59  ;;  %v1354_v0 = vadd.f32 %v1350_v62, %v1283_v60  ;;  %v3177_v2 = vpop.f32.mrb[13].mxu0  ;;  %v3188_v5 = vpop.f32.mrb[13].mxu1  ;;  %v78_v59 = vrot.slane %v3818_v22, %v77_v58  ;;  %v1602_v61 = vld [vmem:[#allocation3 + $0x8] sm:$0x3] }
 0x3fc   :  { %v2839_v6 = vmul.f32 -1.442695, %v1275_v63  ;;  %v2841_v7 = vmul.f32 -1.442695, %v1354_v0  ;;  %80 = vbcast.lane.b32.xlu1 %v78_v59, 256  ;;  %v84_v59 = vsub.s32 6, %v3800_v4 }
 0x3fe   :  { %3633 = vpow2.f32 %v2839_v6 }
 0x3ff   :  { %3635 = vpow2.f32 %v2841_v7 }
 0x401   :  { %v1429_v9 = vpop.f32.mrb[14].mxu0  ;;  %v1503_v11 = vpop.f32.mrb[14].mxu1 }
 0x402   :  { %v1507_v13 = vadd.f32 %v1503_v11, %v1436_v10  ;;  %v3199_v33 = vpop.f32.mrb[15].mxu0  ;;  %v3210_v34 = vpop.f32.mrb[15].mxu1  ;;  %v1433_v18 = vadd.f32 %v1429_v9, %v1362_v14  ;;  %v1755_v11 = vld [vmem:[#allocation5 + $0x8] sm:$0x3] }
 0x404   :  { %v2844_v15 = vmul.f32 -1.442695, %v1507_v13 }
 0x406   :  { %3637 = vpow2.f32 %v2844_v15  ;;  %v1681_v15 = vld [vmem:[#allocation4 + $0x8] sm:$0x3] }
 0x407   :  { %3639 = vtanh.f32 %v1433_v18 }
 0x408   :  { %v3634_v19 = vpop.eup %3633 }
 0x409   :  { %v3636_v20 = vpop.eup %3635  ;;  %v1279_v21 = vadd.f32 1.0, %v3634_v19 }
 0x40a   :  { %v1358_v23 = vadd.f32 1.0, %v3636_v20 }
 0x40b   :  { %3641 = vrcp.f32 %v1279_v21 }
 0x40c   :  { %3643 = vrcp.f32 %v1358_v23 }
 0x410   :  { %v3638_v26 = vpop.eup %3637 }
 0x411   :  { %v3640_v27 = vpop.eup %3639  ;;  %v1511_v36 = vadd.f32 1.0, %v3638_v26 }
 0x413   :  { %3645 = vrcp.f32 %v1511_v36 }
 0x415   :  { %v3642_v28 = vpop.eup %3641 }
 0x416   :  { %v3644_v29 = vpop.eup %3643  ;;  %v1515_v32 = vmul.f32 %v3642_v28, %v3640_v27 }
 0x417   :  { %v1514_v47 = vmul.f32 %v3644_v29, %v3999_v46  ;;  %v118_v46 = vadd.f32 %v3884_v41, %v106_v53 }
 0x419   :  { %v4045_v48 = vadd.f32 %v1515_v32, %v1514_v47  ;;  %127 = vst.msk [vmem:[#allocation2 + $0x8] sm:$0x3] %vm122_vm1, %v118_v46 }
 0x41b   :  { %3647 = vtanh.f32 %v4045_v48 }
 0x41d   :  { %v3646_v49 = vpop.eup %3645 }
 0x420   :  { %v1520_v60 = vld [vmem:[#allocation2 + $0x8] sm:$0x3] }
 0x425   :  { %v3648_v50 = vpop.eup %3647 }
 0x426   :  { %v1518_v51 = vmul.f32 %v3648_v50, %v3646_v49 }
 0x428   :  { %3220 = vmatmul.mubr.msk.f32.vlgmr.msra.gmra.mrb[16].mxu0 %vm247_vm2, %v1518_v51  ;;  %3231 = vmatmul.mubr.msk.f32.vlgmr.msra.gmra.mrb[16].mxu1 %vm247_vm2, %v1518_v51 }
 0x429   :  { %3497 = vmatpush3.bf16.msra.mxu0 %v3822_v24  ;;  %3503 = vmatpush3.bf16.msra.mxu1 %v3826_v25 }
 0x42a   :  { %3498 = vmatprep.subr.bf16.mxu0 %v3741_v1  ;;  %3504 = vmatprep.subr.bf16.mxu1 %v3741_v1 }
 0x42b   :  { %3241 = vmatprep.mubr.msk.f32.mxu0 %vm3742_vm0, %v3743_v3  ;;  %3252 = vmatprep.mubr.msk.f32.mxu1 %vm3742_vm0, %v3743_v3 }
 0x42d   :  { %3500 = vmatpush3.bf16.msra.mxu0 %v3832_v30  ;;  %3506 = vmatpush3.bf16.msra.mxu1 %v3836_v31 }
 0x42e   :  { %3507 = vmatprep.subr.bf16.mxu0 %v3741_v1  ;;  %3513 = vmatprep.subr.bf16.mxu1 %v3741_v1 }
 0x430   :  { %3242 = vmatmul.mubr.msk.f32.vlgmr.msra.gmra.mrb[18].mxu0 %vm247_vm2, %v1518_v51  ;;  %3253 = vmatmul.mubr.msk.f32.vlgmr.msra.gmra.mrb[18].mxu1 %vm247_vm2, %v1518_v51 }
 0x431   :  { %3509 = vmatpush3.bf16.msra.mxu0 %v3802_v8  ;;  %3515 = vmatpush3.bf16.msra.mxu1 %v3804_v12 }
 0x432   :  { %3510 = vmatprep.subr.bf16.mxu0 %v3741_v1  ;;  %3516 = vmatprep.subr.bf16.mxu1 %v3741_v1 }
 0x433   :  { %3263 = vmatprep.mubr.msk.f32.mxu0 %vm3742_vm0, %v3743_v3  ;;  %3274 = vmatprep.mubr.msk.f32.mxu1 %vm3742_vm0, %v3743_v3 }
 0x435   :  { %3512 = vmatpush3.bf16.msra.mxu0 %v3808_v16  ;;  %3518 = vmatpush3.bf16.msra.mxu1 %v3812_v17 }
 0x436   :  { %3519 = vmatprep.subr.bf16.mxu0 %v3741_v1  ;;  %3525 = vmatprep.subr.bf16.mxu1 %v3741_v1 }
 0x46e   :  { %v81_v54 = vpop.permute.xlu1 %80 }
 0x46f   :  { %v107_v35 = vmul.f32 %v3874_v37, %v81_v54  ;;  %v140_v45 = vmul.f32 %v3876_v38, %v81_v54  ;;  %v172_v46 = vmul.f32 %v3879_v39, %v81_v54  ;;  %v204_v55 = vmul.f32 %v3882_v40, %v81_v54 }
 0x471   :  { %v152_v56 = vadd.f32 %v3886_v42, %v140_v45  ;;  %v184_v57 = vadd.f32 %v3889_v43, %v172_v46  ;;  %v216_v58 = vadd.f32 %v3892_v44, %v204_v55 }
 0x473   :  { %160 = vst.msk [vmem:[#allocation3 + $0xa] sm:$0x3] %vm122_vm1, %v152_v56  ;;  %192 = vst.msk [vmem:[#allocation4 + $0xa] sm:$0x3] %vm122_vm1, %v184_v57 }
 0x474   :  { %224 = vst.msk [vmem:[#allocation5 + $0xa] sm:$0x3] %vm122_vm1, %v216_v58 }
 0x4fb   :  { %v1590_v62 = vpop.f32.mrb[16].mxu0  ;;  %v1669_v63 = vpop.f32.mrb[16].mxu1 }
 0x4fc   :  { %v1594_v0 = vadd.f32 %v1590_v62, %v1520_v60  ;;  %v1673_v2 = vadd.f32 %v1669_v63, %v1602_v61  ;;  %v3221_v5 = vpop.f32.mrb[17].mxu0  ;;  %v3232_v6 = vpop.f32.mrb[17].mxu1  ;;  %v85_v60 = vrot.slane %v3818_v22, %v84_v59  ;;  %v1921_v62 = vld [vmem:[#allocation3 + $0xa] sm:$0x3]  ;;  %v2000_v22 = vld [vmem:[#allocation4 + $0xa] sm:$0x3] }
 0x4fe   :  { %v2846_v7 = vmul.f32 -1.442695, %v1594_v0  ;;  %v2848_v9 = vmul.f32 -1.442695, %v1673_v2  ;;  %87 = vbcast.lane.b32.xlu0 %v85_v60, 256 }
 0x500   :  { %3649 = vpow2.f32 %v2846_v7 }
 0x501   :  { %3651 = vpow2.f32 %v2848_v9 }
 0x503   :  { %v1748_v10 = vpop.f32.mrb[18].mxu0  ;;  %v1822_v13 = vpop.f32.mrb[18].mxu1 }
 0x504   :  { %v1826_v33 = vadd.f32 %v1822_v13, %v1755_v11  ;;  %v3243_v34 = vpop.f32.mrb[19].mxu0  ;;  %v3254_v14 = vpop.f32.mrb[19].mxu1  ;;  %v1752_v19 = vadd.f32 %v1748_v10, %v1681_v15  ;;  %v2074_v13 = vld [vmem:[#allocation5 + $0xa] sm:$0x3] }
 0x506   :  { %v2851_v18 = vmul.f32 -1.442695, %v1826_v33 }
 0x508   :  { %3653 = vpow2.f32 %v2851_v18 }
 0x509   :  { %3655 = vtanh.f32 %v1752_v19 }
 0x50a   :  { %v3650_v20 = vpop.eup %3649 }
 0x50b   :  { %v3652_v21 = vpop.eup %3651  ;;  %v1598_v23 = vadd.f32 1.0, %v3650_v20 }
 0x50c   :  { %v1677_v26 = vadd.f32 1.0, %v3652_v21 }
 0x50d   :  { %3657 = vrcp.f32 %v1598_v23 }
 0x50e   :  { %3659 = vrcp.f32 %v1677_v26 }
 0x512   :  { %v3654_v27 = vpop.eup %3653 }
 0x513   :  { %v3656_v28 = vpop.eup %3655  ;;  %v1830_v47 = vadd.f32 1.0, %v3654_v27 }
 0x515   :  { %3661 = vrcp.f32 %v1830_v47 }
 0x517   :  { %v3658_v29 = vpop.eup %3657 }
 0x518   :  { %v3660_v32 = vpop.eup %3659  ;;  %v1834_v36 = vmul.f32 %v3658_v29, %v3656_v28 }
 0x519   :  { %v1833_v49 = vmul.f32 %v3660_v32, %v4045_v48  ;;  %v119_v48 = vadd.f32 %v3884_v41, %v107_v35 }
 0x51b   :  { %v4091_v50 = vadd.f32 %v1834_v36, %v1833_v49  ;;  %128 = vst.msk [vmem:[#allocation2 + $0xa] sm:$0x3] %vm122_vm1, %v119_v48 }
 0x51d   :  { %3663 = vtanh.f32 %v4091_v50 }
 0x51f   :  { %v3662_v51 = vpop.eup %3661 }
 0x522   :  { %v1839_v61 = vld [vmem:[#allocation2 + $0xa] sm:$0x3] }
 0x527   :  { %v3664_v52 = vpop.eup %3663 }
 0x528   :  { %v1837_v53 = vmul.f32 %v3664_v52, %v3662_v51 }
 0x52a   :  { %3264 = vmatmul.mubr.msk.f32.vlgmr.msra.gmra.mrb[20].mxu0 %vm247_vm2, %v1837_v53  ;;  %3275 = vmatmul.mubr.msk.f32.vlgmr.msra.gmra.mrb[20].mxu1 %vm247_vm2, %v1837_v53 }
 0x52b   :  { %3521 = vmatpush3.bf16.msra.mxu0 %v3822_v24  ;;  %3527 = vmatpush3.bf16.msra.mxu1 %v3826_v25 }
 0x52c   :  { %3522 = vmatprep.subr.bf16.mxu0 %v3741_v1  ;;  %3528 = vmatprep.subr.bf16.mxu1 %v3741_v1 }
 0x52d   :  { %3285 = vmatprep.mubr.msk.f32.mxu0 %vm3742_vm0, %v3743_v3  ;;  %3296 = vmatprep.mubr.msk.f32.mxu1 %vm3742_vm0, %v3743_v3 }
 0x52f   :  { %3524 = vmatpush3.bf16.msra.mxu0 %v3832_v30  ;;  %3530 = vmatpush3.bf16.msra.mxu1 %v3836_v31 }
 0x530   :  { %3531 = vmatprep.subr.bf16.mxu0 %v3741_v1  ;;  %3537 = vmatprep.subr.bf16.mxu1 %v3741_v1 }
 0x532   :  { %3286 = vmatmul.mubr.msk.f32.vlgmr.msra.gmra.mrb[22].mxu0 %vm247_vm2, %v1837_v53  ;;  %3297 = vmatmul.mubr.msk.f32.vlgmr.msra.gmra.mrb[22].mxu1 %vm247_vm2, %v1837_v53 }
 0x533   :  { %3533 = vmatpush3.bf16.msra.mxu0 %v3802_v8  ;;  %3539 = vmatpush3.bf16.msra.mxu1 %v3804_v12 }
 0x534   :  { %3534 = vmatprep.subr.bf16.mxu0 %v3741_v1  ;;  %3540 = vmatprep.subr.bf16.mxu1 %v3741_v1 }
 0x535   :  { %3307 = vmatprep.mubr.msk.f32.mxu0 %vm3742_vm0, %v3743_v3  ;;  %3318 = vmatprep.mubr.msk.f32.mxu1 %vm3742_vm0, %v3743_v3 }
 0x537   :  { %3536 = vmatpush3.bf16.msra.mxu0 %v3808_v16  ;;  %3542 = vmatpush3.bf16.msra.mxu1 %v3812_v17 }
 0x538   :  { %3543 = vmatprep.subr.bf16.mxu0 %v3741_v1  ;;  %3549 = vmatprep.subr.bf16.mxu1 %v3741_v1 }
 0x570   :  { %v88_v35 = vpop.permute.xlu0 %87 }
 0x571   :  { %v108_v45 = vmul.f32 %v3874_v37, %v88_v35  ;;  %v141_v46 = vmul.f32 %v3876_v38, %v88_v35  ;;  %v173_v55 = vmul.f32 %v3879_v39, %v88_v35  ;;  %v205_v48 = vmul.f32 %v3882_v40, %v88_v35 }
 0x573   :  { %v153_v56 = vadd.f32 %v3886_v42, %v141_v46  ;;  %v185_v57 = vadd.f32 %v3889_v43, %v173_v55  ;;  %v217_v58 = vadd.f32 %v3892_v44, %v205_v48 }
 0x575   :  { %161 = vst.msk [vmem:[#allocation3 + $0xc] sm:$0x3] %vm122_vm1, %v153_v56  ;;  %193 = vst.msk [vmem:[#allocation4 + $0xc] sm:$0x3] %vm122_vm1, %v185_v57 }
 0x576   :  { %225 = vst.msk [vmem:[#allocation5 + $0xc] sm:$0x3] %vm122_vm1, %v217_v58 }
 0x5fd   :  { %v1909_v63 = vpop.f32.mrb[20].mxu0  ;;  %v1988_v0 = vpop.f32.mrb[20].mxu1 }
 0x5fe   :  { %v1913_v2 = vadd.f32 %v1909_v63, %v1839_v61  ;;  %v1992_v5 = vadd.f32 %v1988_v0, %v1921_v62  ;;  %v3265_v6 = vpop.f32.mrb[21].mxu0  ;;  %v3276_v7 = vpop.f32.mrb[21].mxu1  ;;  %v2240_v61 = vld [vmem:[#allocation3 + $0xc] sm:$0x3] }
 0x600   :  { %v2853_v9 = vmul.f32 -1.442695, %v1913_v2  ;;  %v2855_v10 = vmul.f32 -1.442695, %v1992_v5 }
 0x602   :  { %3665 = vpow2.f32 %v2853_v9 }
 0x603   :  { %3667 = vpow2.f32 %v2855_v10 }
 0x605   :  { %v2067_v11 = vpop.f32.mrb[22].mxu0  ;;  %v2141_v33 = vpop.f32.mrb[22].mxu1 }
 0x606   :  { %v2145_v34 = vadd.f32 %v2141_v33, %v2074_v13  ;;  %v3287_v14 = vpop.f32.mrb[23].mxu0  ;;  %v3298_v15 = vpop.f32.mrb[23].mxu1  ;;  %v2071_v19 = vadd.f32 %v2067_v11, %v2000_v22  ;;  %v2319_v33 = vld [vmem:[#allocation4 + $0xc] sm:$0x3] }
 0x608   :  { %v2858_v18 = vmul.f32 -1.442695, %v2145_v34 }
 0x60a   :  { %3669 = vpow2.f32 %v2858_v18 }
 0x60b   :  { %3671 = vtanh.f32 %v2071_v19 }
 0x60c   :  { %v3666_v20 = vpop.eup %3665 }
 0x60d   :  { %v3668_v21 = vpop.eup %3667  ;;  %v1917_v23 = vadd.f32 1.0, %v3666_v20 }
 0x60e   :  { %v1996_v26 = vadd.f32 1.0, %v3668_v21 }
 0x60f   :  { %3673 = vrcp.f32 %v1917_v23 }
 0x610   :  { %3675 = vrcp.f32 %v1996_v26 }
 0x614   :  { %v3670_v27 = vpop.eup %3669 }
 0x615   :  { %v3672_v28 = vpop.eup %3671  ;;  %v2149_v47 = vadd.f32 1.0, %v3670_v27 }
 0x617   :  { %3677 = vrcp.f32 %v2149_v47 }
 0x619   :  { %v3674_v29 = vpop.eup %3673 }
 0x61a   :  { %v3676_v32 = vpop.eup %3675  ;;  %v2153_v36 = vmul.f32 %v3674_v29, %v3672_v28 }
 0x61b   :  { %v2152_v49 = vmul.f32 %v3676_v32, %v4091_v50  ;;  %v120_v50 = vadd.f32 %v3884_v41, %v108_v45 }
 0x61d   :  { %v4137_v51 = vadd.f32 %v2153_v36, %v2152_v49  ;;  %129 = vst.msk [vmem:[#allocation2 + $0xc] sm:$0x3] %vm122_vm1, %v120_v50 }
 0x61f   :  { %3679 = vtanh.f32 %v4137_v51 }
 0x621   :  { %v3678_v52 = vpop.eup %3677 }
 0x624   :  { %v2158_v60 = vld [vmem:[#allocation2 + $0xc] sm:$0x3] }
 0x629   :  { %v3680_v53 = vpop.eup %3679 }
 0x62a   :  { %v2156_v54 = vmul.f32 %v3680_v53, %v3678_v52 }
 0x62c   :  { %3308 = vmatmul.mubr.msk.f32.vlgmr.msra.gmra.mrb[24].mxu0 %vm247_vm2, %v2156_v54  ;;  %3319 = vmatmul.mubr.msk.f32.vlgmr.msra.gmra.mrb[24].mxu1 %vm247_vm2, %v2156_v54 }
 0x62d   :  { %3545 = vmatpush3.bf16.msra.mxu0 %v3822_v24  ;;  %3551 = vmatpush3.bf16.msra.mxu1 %v3826_v25 }
 0x62e   :  { %3546 = vmatprep.subr.bf16.mxu0 %v3741_v1  ;;  %3552 = vmatprep.subr.bf16.mxu1 %v3741_v1 }
 0x62f   :  { %3329 = vmatprep.mubr.msk.f32.mxu0 %vm3742_vm0, %v3743_v3  ;;  %3340 = vmatprep.mubr.msk.f32.mxu1 %vm3742_vm0, %v3743_v3 }
 0x631   :  { %3548 = vmatpush3.bf16.msra.mxu0 %v3832_v30  ;;  %3554 = vmatpush3.bf16.msra.mxu1 %v3836_v31 }
 0x632   :  { %3555 = vmatprep.subr.bf16.mxu0 %v3741_v1  ;;  %3561 = vmatprep.subr.bf16.mxu1 %v3741_v1 }
 0x634   :  { %3330 = vmatmul.mubr.msk.f32.vlgmr.msra.gmra.mrb[26].mxu0 %vm247_vm2, %v2156_v54  ;;  %3341 = vmatmul.mubr.msk.f32.vlgmr.msra.gmra.mrb[26].mxu1 %vm247_vm2, %v2156_v54 }
 0x635   :  { %3557 = vmatpush3.bf16.msra.mxu0 %v3802_v8  ;;  %3563 = vmatpush3.bf16.msra.mxu1 %v3804_v12  ;;  %v91_v8 = vsub.s32 7, %v3800_v4  ;;  %v3713_v12 = vld [vmem:[%s4222_s0] sm:$0xff]  ;;  %v2393_v4 = vld [vmem:[#allocation5 + $0xc] sm:$0x3] }
 0x636   :  { %3558 = vmatprep.subr.bf16.mxu0 %v3741_v1  ;;  %3564 = vmatprep.subr.bf16.mxu1 %v3741_v1 }
 0x637   :  { %3351 = vmatprep.mubr.msk.f32.mxu0 %vm3742_vm0, %v3743_v3  ;;  %3362 = vmatprep.mubr.msk.f32.mxu1 %vm3742_vm0, %v3743_v3  ;;  %v92_v59 = vrot.slane %v3713_v12, %v91_v8 }
 0x639   :  { %3560 = vmatpush3.bf16.msra.mxu0 %v3808_v16  ;;  %3566 = vmatpush3.bf16.msra.mxu1 %v3812_v17 }
 0x63a   :  { %3567 = vmatprep.subr.bf16.mxu0 %v3741_v1  ;;  %3573 = vmatprep.subr.bf16.mxu1 %v3741_v1 }
 0x63b   :  { %94 = vbcast.lane.b32.xlu1 %v92_v59, 256 }
 0x6ad   :  { %v95_v52 = vpop.permute.xlu1 %94 }
 0x6ae   :  { %v109_v53 = vmul.f32 %v3874_v37, %v95_v52  ;;  %v142_v54 = vmul.f32 %v3876_v38, %v95_v52  ;;  %v174_v35 = vmul.f32 %v3879_v39, %v95_v52  ;;  %v206_v45 = vmul.f32 %v3882_v40, %v95_v52 }
 0x6b0   :  { %v154_v46 = vadd.f32 %v3886_v42, %v142_v54  ;;  %v186_v37 = vadd.f32 %v3889_v43, %v174_v35  ;;  %v218_v38 = vadd.f32 %v3892_v44, %v206_v45 }
 0x6b2   :  { %162 = vst.msk [vmem:[#allocation3 + $0xe] sm:$0x3] %vm122_vm1, %v154_v46  ;;  %194 = vst.msk [vmem:[#allocation4 + $0xe] sm:$0x3] %vm122_vm1, %v186_v37 }
 0x6b3   :  { %226 = vst.msk [vmem:[#allocation5 + $0xe] sm:$0x3] %vm122_vm1, %v218_v38 }
 0x6b9   :  { %v2638_v57 = vld [vmem:[#allocation4 + $0xe] sm:$0x3] }
 0x6ff   :  { %v2228_v62 = vpop.f32.mrb[24].mxu0  ;;  %v2307_v63 = vpop.f32.mrb[24].mxu1 }
 0x700   :  { %v2232_v0 = vadd.f32 %v2228_v62, %v2158_v60  ;;  %v2311_v16 = vadd.f32 %v2307_v63, %v2240_v61  ;;  %v3309_v2 = vpop.f32.mrb[25].mxu0  ;;  %v3320_v17 = vpop.f32.mrb[25].mxu1 }
 0x702   :  { %v2860_v5 = vmul.f32 -1.442695, %v2232_v0  ;;  %v2862_v6 = vmul.f32 -1.442695, %v2311_v16 }
 0x704   :  { %3681 = vpow2.f32 %v2860_v5 }
 0x705   :  { %3683 = vpow2.f32 %v2862_v6 }
 0x707   :  { %v2386_v7 = vpop.f32.mrb[26].mxu0  ;;  %v2460_v9 = vpop.f32.mrb[26].mxu1 }
 0x708   :  { %v2464_v10 = vadd.f32 %v2460_v9, %v2393_v4  ;;  %v3331_v11 = vpop.f32.mrb[27].mxu0  ;;  %v3342_v13 = vpop.f32.mrb[27].mxu1  ;;  %v2390_v14 = vadd.f32 %v2386_v7, %v2319_v33  ;;  %v2873_v9 = vld [vmem:[%s4226_s4] ss:$0 sm:$0xff] }
 0x709   :  { %v2874_v33 = vld [vmem:[#allocation6] ss:$0 sm:$0xff] }
 0x70a   :  { %v2865_v34 = vmul.f32 -1.442695, %v2464_v10 }
 0x70c   :  { %3685 = vpow2.f32 %v2865_v34 }
 0x70d   :  { %3687 = vtanh.f32 %v2390_v14 }
 0x70e   :  { %v3682_v15 = vpop.eup %3681 }
 0x70f   :  { %v3684_v22 = vpop.eup %3683  ;;  %v2236_v18 = vadd.f32 1.0, %v3682_v15 }
 0x710   :  { %v2315_v19 = vadd.f32 1.0, %v3684_v22 }
 0x711   :  { %3689 = vrcp.f32 %v2236_v18 }
 0x712   :  { %3691 = vrcp.f32 %v2315_v19 }
 0x716   :  { %v3686_v20 = vpop.eup %3685 }
 0x717   :  { %v3688_v21 = vpop.eup %3687  ;;  %v2468_v28 = vadd.f32 1.0, %v3686_v20 }
 0x719   :  { %3693 = vrcp.f32 %v2468_v28 }
 0x71b   :  { %v3690_v23 = vpop.eup %3689 }
 0x71c   :  { %v3692_v26 = vpop.eup %3691  ;;  %v2472_v27 = vmul.f32 %v3690_v23, %v3688_v21 }
 0x71d   :  { %v2471_v29 = vmul.f32 %v3692_v26, %v4137_v51  ;;  %v121_v51 = vadd.f32 %v3884_v41, %v109_v53 }
 0x71f   :  { %v4185_v32 = vadd.f32 %v2472_v27, %v2471_v29  ;;  %130 = vst.msk [vmem:[#allocation2 + $0xe] sm:$0x3] %vm122_vm1, %v121_v51 }
 0x721   :  { %3695 = vtanh.f32 %v4185_v32 }
 0x723   :  { %v3694_v36 = vpop.eup %3693 }
 0x72b   :  { %v3696_v47 = vpop.eup %3695 }
 0x72c   :  { %v2475_v49 = vmul.f32 %v3696_v47, %v3694_v36 }
 0x72e   :  { %3352 = vmatmul.mubr.msk.f32.vlgmr.msra.gmra.mrb[28].mxu0 %vm247_vm2, %v2475_v49  ;;  %3363 = vmatmul.mubr.msk.f32.vlgmr.msra.gmra.mrb[28].mxu1 %vm247_vm2, %v2475_v49 }
 0x72f   :  { %3569 = vmatpush3.bf16.msra.mxu0 %v3822_v24  ;;  %3575 = vmatpush3.bf16.msra.mxu1 %v3826_v25  ;;  %v2559_v24 = vld [vmem:[#allocation3 + $0xe] sm:$0x3] }
 0x730   :  { %3570 = vmatprep.subr.bf16.mxu0 %v3741_v1  ;;  %3576 = vmatprep.subr.bf16.mxu1 %v3741_v1  ;;  %v2477_v1 = vld [vmem:[#allocation2 + $0xe] sm:$0x3] }
 0x731   :  { %3373 = vmatprep.mubr.msk.f32.mxu0 %vm3742_vm0, %v3743_v3  ;;  %3384 = vmatprep.mubr.msk.f32.mxu1 %vm3742_vm0, %v3743_v3 }
 0x733   :  { %3572 = vmatpush3.bf16.msra.mxu0 %v3832_v30  ;;  %3578 = vmatpush3.bf16.msra.mxu1 %v3836_v31  ;;  %v2712_v30 = vld [vmem:[#allocation5 + $0xe] sm:$0x3] }
 0x736   :  { %3374 = vmatmul.mubr.msk.f32.vlgmr.msra.gmra.mrb[30].mxu0 %vm247_vm2, %v2475_v49  ;;  %3385 = vmatmul.mubr.msk.f32.vlgmr.msra.gmra.mrb[30].mxu1 %vm247_vm2, %v2475_v49 }
 0x801   :  { %v2547_v25 = vpop.f32.mrb[28].mxu0  ;;  %v2626_v3 = vpop.f32.mrb[28].mxu1 }
 0x802   :  { %v2551_v39 = vadd.f32 %v2547_v25, %v2477_v1  ;;  %v2630_v40 = vadd.f32 %v2626_v3, %v2559_v24  ;;  %v3353_v41 = vpop.f32.mrb[29].mxu0  ;;  %v3364_v42 = vpop.f32.mrb[29].mxu1 }
 0x804   :  { %v2867_v43 = vmul.f32 -1.442695, %v2551_v39  ;;  %v2869_v44 = vmul.f32 -1.442695, %v2630_v40 }
 0x806   :  { %3697 = vpow2.f32 %v2867_v43 }
 0x807   :  { %3699 = vpow2.f32 %v2869_v44 }
 0x809   :  { %v2705_v55 = vpop.f32.mrb[30].mxu0  ;;  %v2779_v48 = vpop.f32.mrb[30].mxu1 }
 0x80a   :  { %v2783_v31 = vadd.f32 %v2779_v48, %v2712_v30  ;;  %v3375_v50 = vpop.f32.mrb[31].mxu0  ;;  %v3386_v56 = vpop.f32.mrb[31].mxu1  ;;  %v2709_v8 = vadd.f32 %v2705_v55, %v2638_v57 }
 0x80c   :  { %v2872_v58 = vmul.f32 -1.442695, %v2783_v31 }
 0x80e   :  { %3701 = vpow2.f32 %v2872_v58 }
 0x80f   :  { %3703 = vtanh.f32 %v2709_v8 }
 0x810   :  { %v3698_v12 = vpop.eup %3697 }
 0x811   :  { %v3700_v59 = vpop.eup %3699  ;;  %v2555_v60 = vadd.f32 1.0, %v3698_v12 }
 0x812   :  { %v2634_v61 = vadd.f32 1.0, %v3700_v59 }
 0x813   :  { %3705 = vrcp.f32 %v2555_v60 }
 0x814   :  { %3707 = vrcp.f32 %v2634_v61 }
 0x818   :  { %v3702_v62 = vpop.eup %3701 }
 0x819   :  { %v3704_v63 = vpop.eup %3703  ;;  %v2787_v17 = vadd.f32 1.0, %v3702_v62 }
 0x81b   :  { %3709 = vrcp.f32 %v2787_v17 }
 0x81d   :  { %v3706_v0 = vpop.eup %3705 }
 0x81e   :  { %v3708_v16 = vpop.eup %3707  ;;  %v2791_v2 = vmul.f32 %v3706_v0, %v3704_v63 }
 0x81f   :  { %v2790_v5 = vmul.f32 %v3708_v16, %v4185_v32 }
 0x821   :  { %v2792_v6 = vadd.f32 %v2791_v2, %v2790_v5 }
 0x823   :  { %3711 = vtanh.f32 %v2792_v6 }
 0x825   :  { %v3710_v7 = vpop.eup %3709 }
 0x82d   :  { %v3712_v4 = vpop.eup %3711 }
 0x82e   :  { %v2794_v10 = vmul.f32 %v3712_v4, %v3710_v7 }
 0x830   :  { %v2802_v11 = vmul.f32 %v2873_v9, %v2794_v10 }
 0x832   :  { %v2803_v13 = vsel %vm122_vm1, %v2802_v11, 0.0 }
 0x833   :  { %2804 = vadd.xlane.f32.xlu0 %v2803_v13 }
 0x8c0   :  { %v2805_v34 = vpop.xlane.xlu0 %2804 }
 0x8c1   :  { %v2813_v14 = vadd.f32 %v2874_v33, %v2805_v34 }
 0x8c3   :  { %2815 = vst.msk [vmem:[%s4228_s6] sm:$0x3] %vm2814_vm3, %v2813_v14 }
 0x8c4   :  { %2820 = vsyncpa [#allocation8], 1 }

</bundles_post_ra>
